<compile_context>
chip_gen: v6e
topology: v6e:2x2x1
jax: 0.10.0
libtpu: 0.0.40
codegen_flags: <defaults>
</compile_context>

<pallas_src>
import functools

import jax
import jax.numpy as jnp
from jax import lax
from jax.experimental import pallas as pl
from jax.experimental.pallas import tpu as pltpu


H1 = 100             # fc1 width of each branch
H2 = 50              # fc2 width of each branch
HHP = 208            # padded combined hidden-1 dim (2*H1 + const + 2 passthrough = 203 -> 208)
H2P = 104            # padded combined hidden-2 dim (2*H2 + 2 passthrough = 102 -> 104)

HID_ONE = 2 * H1     # 200: constant-1 hidden unit (carries fc2 biases)
HID_XP = 2 * H1 + 1  # 201: relu(x)  passthrough
HID_XN = 2 * H1 + 2  # 202: relu(-x) passthrough
G_XP = 2 * H2        # 100: relu(x)  after layer 2
G_XN = 2 * H2 + 1    # 101: relu(-x) after layer 2

F_BLK = 6            # features per micro-block: 6 feature rows + t row + ones row = 8 rows
K1 = F_BLK + 2       # 8
ROW_T = F_BLK        # 6
ROW_ONE = F_BLK + 1  # 7

# Tiled VMEM bytes per feature of packed weights:
#   w1 f32 (8,208)->(8,256)*4, w2 bf16 (104,208)->(112,256)*2, w3 bf16 (8,104)->(16,128)*2
_PER_FEAT_VMEM = 8 * 256 * 4 + 112 * 256 * 2 + 16 * 128 * 2
_RESIDENT_WEIGHT_BUDGET = 10 * 1024 * 1024   # single slab copy (x2 double-buffered < 32 MiB scoped)
_STREAM_WEIGHT_BUDGET = 4 * 1024 * 1024      # per-step weight block when streaming


def _round_up(a, b):
    return (a + b - 1) // b * b


def _cdiv(a, b):
    return (a + b - 1) // b


def _survival_kernel(xin_ref, w1_ref, w2_ref, w3_ref, out_ref, *, fs_mb, f_blk):
    # Output block is resident across the feature-superblock grid axis -> accumulator.
    @pl.when(pl.program_id(1) == 0)
    def _():
        out_ref[...] = jnp.zeros_like(out_ref)

    tb = out_ref.shape[-1]

    def feature_step(ff, xin, acc8):
        # layer 1 (+bias, +linear passthrough): h = relu(W1^T @ xin) -> (HHP, TB)
        h = lax.dot_general(w1_ref[ff], xin, (((0,), (0,)), ((), ())),
                            preferred_element_type=jnp.float32)
        h = jnp.maximum(h, 0.0).astype(jnp.bfloat16)
        # layer 2 (both branches side by side, biases folded): bf16 MXU, f32 acc
        g = jnp.dot(w2_ref[ff], h, preferred_element_type=jnp.float32)    # (H2P, TB)
        g = jnp.maximum(g, 0.0).astype(jnp.bfloat16)
        # layer 3 readout (+ linear-branch weight): row 0 carries the result
        r = jnp.dot(w3_ref[ff], g, preferred_element_type=jnp.float32)    # (8, TB)
        return acc8 + r

    def mb_body(mb, acc8):
        xin = xin_ref[mb]                                  # (K1, TB) fp32
        for f in range(f_blk):                             # statically unrolled
            acc8 = feature_step(mb * f_blk + f, xin, acc8)
        return acc8

    acc8 = jnp.zeros((8, tb), jnp.float32)
    if fs_mb <= 8:                                         # short: static unroll
        for mb in range(fs_mb):
            acc8 = mb_body(mb, acc8)
    else:                                                  # long: rolled loop
        acc8 = lax.fori_loop(0, fs_mb, mb_body, acc8)

    out_ref[...] += acc8[0:1, :]


def init_params(key, nfeat):
    """Deterministic synthetic parameters in PyTorch nn.Linear layout (out, in),
    stacked over the feature axis."""
    ks = jax.random.split(key, 11)
    s = 0.1
    f32 = jnp.float32
    return {
        "w_lin":  s * jax.random.normal(ks[0],  (nfeat, 1, 1),   f32),
        "nl_w1":  s * jax.random.normal(ks[1],  (nfeat, H1, 1),  f32),
        "nl_b1":  s * jax.random.normal(ks[2],  (nfeat, H1),     f32),
        "nl_w2":  s * jax.random.normal(ks[3],  (nfeat, H2, H1), f32),
        "nl_b2":  s * jax.random.normal(ks[4],  (nfeat, H2),     f32),
        "nl_w3":  s * jax.random.normal(ks[5],  (nfeat, 1, H2),  f32),
        "nlt_w1": s * jax.random.normal(ks[6],  (nfeat, H1, 2),  f32),
        "nlt_b1": s * jax.random.normal(ks[7],  (nfeat, H1),     f32),
        "nlt_w2": s * jax.random.normal(ks[8],  (nfeat, H2, H1), f32),
        "nlt_b2": s * jax.random.normal(ks[9],  (nfeat, H2),     f32),
        "nlt_w3": s * jax.random.normal(ks[10], (nfeat, 1, H2),  f32),
    }


def pack_params(params, nfeat, f_blk=F_BLK):
    """Pack per-feature weights into 3 dense slabs (layer-2/3 in bf16) and pick the
    feature-superblock size so the slabs stay VMEM-resident whenever they fit."""
    nmb_raw = _cdiv(nfeat, f_blk)
    per_mb = f_blk * _PER_FEAT_VMEM
    if nmb_raw * per_mb <= _RESIDENT_WEIGHT_BUDGET:
        fs_mb, nfs = nmb_raw, 1            # whole weight set VMEM-resident
    else:
        fs_mb = max(1, _STREAM_WEIGHT_BUDGET // per_mb)
        nfs = _cdiv(nmb_raw, fs_mb)        # streamed super-blocks; output accumulates
    nmb_p = nfs * fs_mb
    nfeat_p = nmb_p * f_blk
    f32 = jnp.float32

    wlin = params["w_lin"].reshape(nfeat).astype(f32)

    # ---- slab 1: first layer, (nfeat_p, K1, HHP), fp32 (tiny; keeps the K=8
    #      transposed dot on the known-good fp32 path) ----
    w1s = jnp.zeros((nfeat_p, K1, HHP), f32)
    featrow = jnp.zeros((nfeat_p, HHP), f32)
    featrow = featrow.at[:nfeat, 0:H1].set(params["nl_w1"][:, :, 0])
    featrow = featrow.at[:nfeat, H1:2 * H1].set(params["nlt_w1"][:, :, 0])
    featrow = featrow.at[:nfeat, HID_XP].set(1.0)
    featrow = featrow.at[:nfeat, HID_XN].set(-1.0)
    w1s = w1s.at[jnp.arange(nfeat_p), jnp.arange(nfeat_p) % f_blk, :].set(featrow)
    trow = jnp.zeros((nfeat_p, HHP), f32)
    trow = trow.at[:nfeat, H1:2 * H1].set(params["nlt_w1"][:, :, 1])
    w1s = w1s.at[:, ROW_T, :].set(trow)
    brow = jnp.zeros((nfeat_p, HHP), f32)
    brow = brow.at[:nfeat, 0:H1].set(params["nl_b1"])
    brow = brow.at[:nfeat, H1:2 * H1].set(params["nlt_b1"])
    brow = brow.at[:nfeat, HID_ONE].set(1.0)
    w1s = w1s.at[:, ROW_ONE, :].set(brow)

    # ---- slab 2: second layer (both branches, bias folded via constant unit),
    #      (nfeat_p, H2P, HHP), bf16 (dominant slab: ~91% of weight bytes) ----
    w2s = jnp.zeros((nfeat_p, H2P, HHP), f32)
    w2s = w2s.at[:nfeat, 0:H2, 0:H1].set(params["nl_w2"])
    w2s = w2s.at[:nfeat, 0:H2, HID_ONE].set(params["nl_b2"])
    w2s = w2s.at[:nfeat, H2:2 * H2, H1:2 * H1].set(params["nlt_w2"])
    w2s = w2s.at[:nfeat, H2:2 * H2, HID_ONE].set(params["nlt_b2"])
    w2s = w2s.at[:nfeat, G_XP, HID_XP].set(1.0)
    w2s = w2s.at[:nfeat, G_XN, HID_XN].set(1.0)

    # ---- slab 3: readout (+ linear-branch weight), (nfeat_p, 8, H2P), bf16 ----
    w3s = jnp.zeros((nfeat_p, 8, H2P), f32)
    w3s = w3s.at[:nfeat, 0, 0:H2].set(params["nl_w3"][:, 0, :])
    w3s = w3s.at[:nfeat, 0, H2:2 * H2].set(params["nlt_w3"][:, 0, :])
    w3s = w3s.at[:nfeat, 0, G_XP].set(wlin)
    w3s = w3s.at[:nfeat, 0, G_XN].set(-wlin)

    return {"w1s": w1s,
            "w2s": w2s.astype(jnp.bfloat16),
            "w3s": w3s.astype(jnp.bfloat16),
            "nfeat": nfeat, "nfeat_p": nfeat_p, "f_blk": f_blk,
            "fs_mb": fs_mb, "nfs": nfs}


def model_survival_forward(x, packed):
    """x: (B, nfeat+1) -> (B,) float32."""
    x = x.astype(jnp.float32)
    B = x.shape[0]
    nfeat = packed["nfeat"]
    nfeat_p = packed["nfeat_p"]
    f_blk = packed["f_blk"]
    fs_mb = packed["fs_mb"]
    nfs = packed["nfs"]
    nmb = nfeat_p // f_blk
    feat_per_step = fs_mb * f_blk            # features per feature-superblock grid step

    # Batch tile: lane-dense; >=2 tiles once B > 128 so both TensorCores are used on
    # v7x; 256 for large B to amortize per-step overhead (v5e-safe register pressure).
    tb = 128 if B <= 256 else 256
    bp = _round_up(B, tb)
    nb = bp // tb

    # Per-micro-block input slab (nmb, K1, bp):
    #   rows 0..f_blk-1 : this micro-block's feature columns
    #   row  ROW_T      : time column
    #   row  ROW_ONE    : ones (bias / constant hidden unit)
    xcols = jnp.pad(x[:, :nfeat].T, ((0, nfeat_p - nfeat), (0, bp - B)))
    feat_rows = xcols.reshape(nmb, f_blk, bp)
    t_row = jnp.broadcast_to(
        jnp.pad(x[:, nfeat], (0, bp - B))[None, None, :], (nmb, 1, bp))
    one_row = jnp.ones((nmb, 1, bp), jnp.float32)
    xin_all = jnp.concatenate([feat_rows, t_row, one_row], axis=1)   # (nmb, K1, bp)

    kernel = functools.partial(_survival_kernel, fs_mb=fs_mb, f_blk=f_blk)

    out = pl.pallas_call(
        kernel,
        out_shape=jax.ShapeDtypeStruct((1, bp), jnp.float32),
        grid_spec=pltpu.PrefetchScalarGridSpec(
            num_scalar_prefetch=0,
            grid=(nb, nfs),
            in_specs=[
                pl.BlockSpec((fs_mb, K1, tb), lambda bi, fi: (fi, 0, bi)),
                # Weight slabs: the block index depends only on fi; with nfs == 1 it
                # never changes, so Pallas fetches the weights exactly once and they
                # stay VMEM-resident across every batch tile.
                pl.BlockSpec((feat_per_step, K1, HHP), lambda bi, fi: (fi, 0, 0)),
                pl.BlockSpec((feat_per_step, H2P, HHP), lambda bi, fi: (fi, 0, 0)),
                pl.BlockSpec((feat_per_step, 8, H2P), lambda bi, fi: (fi, 0, 0)),
            ],
            out_specs=pl.BlockSpec((1, tb), lambda bi, fi: (0, bi)),
        ),
        compiler_params=pltpu.CompilerParams(
            dimension_semantics=("parallel", "arbitrary"),
            vmem_limit_bytes=32 * 1024 * 1024),
    )(xin_all, packed["w1s"], packed["w2s"], packed["w3s"])
    return out[0, :B]


def reference_forward(x, params, nfeat):
    """Pure-JAX fp32 reference matching the PyTorch module semantics."""
    x = x.astype(jnp.float32)
    t = x[:, nfeat:nfeat + 1]
    total = jnp.zeros((x.shape[0],), jnp.float32)
    for i in range(nfeat):
        xc = x[:, i:i + 1]                                                 # (B,1)
        lin = xc @ params["w_lin"][i].T
        h1 = jax.nn.relu(xc @ params["nl_w1"][i].T + params["nl_b1"][i])
        h2 = jax.nn.relu(h1 @ params["nl_w2"][i].T + params["nl_b2"][i])
        nl = h2 @ params["nl_w3"][i].T
        xt = jnp.concatenate([xc, t], axis=-1)                             # (B,2)
        g1 = jax.nn.relu(xt @ params["nlt_w1"][i].T + params["nlt_b1"][i])
        g2 = jax.nn.relu(g1 @ params["nlt_w2"][i].T + params["nlt_b2"][i])
        nlt = g2 @ params["nlt_w3"][i].T
        total = total + (lin + nl + nlt)[:, 0]
    return total


if __name__ == "__main__":
    nfeat = 4
    B = 8

    key = jax.random.PRNGKey(0)
    k_x, k_p = jax.random.split(key)

    # Input: (B, nfeat + 1); last column is the time variable.
    x = jax.random.normal(k_x, (B, nfeat + 1), jnp.float32)
    params = init_params(k_p, nfeat)
    packed = pack_params(params, nfeat)

    out = model_survival_forward(x, packed)
    out = jax.block_until_ready(out)

    ref = reference_forward(x, params, nfeat)
    assert out.shape == (B,)
    # Layers 2/3 run on the bf16 MXU path (fp32 accumulation), so the tolerance is
    # looser than a pure-fp32 comparison.
    assert jnp.allclose(out, ref, atol=2e-2, rtol=2e-2), (out, ref)

    print("KERNEL_OK")
</pallas_src>

<mosaic_0001>
module attributes {stable_mosaic.version = 11 : i64} {
  func.func @_survival_kernel(%arg0: i32, %arg1: i32, %arg2: memref<1x8x128xf32, #tpu.memory_space<vmem>>, %arg3: memref<6x8x208xf32, #tpu.memory_space<vmem>>, %arg4: memref<6x104x208xbf16, #tpu.memory_space<vmem>>, %arg5: memref<6x8x104xbf16, #tpu.memory_space<vmem>>, %arg6: memref<1x128xf32, #tpu.memory_space<vmem>>) attributes {dimension_semantics = [#tpu.dimension_semantics<parallel>, #tpu.dimension_semantics<arbitrary>], iteration_bounds = array<i64: 1, 1>, scalar_prefetch = 0 : i64, scratch_operands = 0 : i64, tpu.core_type = #tpu.core_type<tc>, window_params = [{transform_indices = @transform_0, window_bounds = array<i64: 1, 8, 128>}, {transform_indices = @transform_1, window_bounds = array<i64: 6, 8, 208>}, {transform_indices = @transform_2, window_bounds = array<i64: 6, 104, 208>}, {transform_indices = @transform_3, window_bounds = array<i64: 6, 8, 104>}, {transform_indices = @transform_4, window_bounds = array<i64: 1, 128>}]} {
    %c0_i32 = arith.constant 0 : i32
    %0 = arith.cmpi eq, %arg1, %c0_i32 : i32
    %1 = arith.extui %0 : i1 to i32
    %c0_i32_0 = arith.constant 0 : i32
    %2 = arith.cmpi ne, %1, %c0_i32_0 : i32
    scf.if %2 {
      %cst_86 = arith.constant 0.000000e+00 : f32
      %106 = vector.broadcast %cst_86 : f32 to vector<1x128xf32>
      %c0_87 = arith.constant 0 : index
      %c0_88 = arith.constant 0 : index
      %107 = vector.load %arg6[%c0_87, %c0_88] : memref<1x128xf32, #tpu.memory_space<vmem>>, vector<1x128xf32>
      tpu.vector_store %arg6[%c0_87, %c0_88], %106 {strides = array<i32>} : memref<1x128xf32, #tpu.memory_space<vmem>>, vector<1x128xf32>,
    } else {
    }
    %cst = arith.constant 0.000000e+00 : f32
    %3 = vector.broadcast %cst : f32 to vector<8x128xf32>
    %c0 = arith.constant 0 : index
    %c0_1 = arith.constant 0 : index
    %c0_2 = arith.constant 0 : index
    %4 = vector.load %arg2[%c0, %c0_1, %c0_2] : memref<1x8x128xf32, #tpu.memory_space<vmem>>, vector<1x8x128xf32>
    %5 = vector.shape_cast %4 : vector<1x8x128xf32> to vector<8x128xf32>
    %c0_3 = arith.constant 0 : index
    %c0_4 = arith.constant 0 : index
    %c0_5 = arith.constant 0 : index
    %6 = vector.load %arg3[%c0_3, %c0_4, %c0_5] : memref<6x8x208xf32, #tpu.memory_space<vmem>>, vector<1x8x208xf32>
    %7 = vector.shape_cast %6 : vector<1x8x208xf32> to vector<8x208xf32>
    %cst_6 = arith.constant dense<0.000000e+00> : vector<208x128xf32>
    %8 = tpu.matmul %7, %5, %cst_6 {dimension_numbers = #tpu.dot_dimension_numbers<[0], [0], [1], [1], [0, 1, 1, 1], [], []>} : vector<8x208xf32>, vector<8x128xf32>, vector<208x128xf32> -> vector<208x128xf32>
    %cst_7 = arith.constant 0.000000e+00 : f32
    %9 = vector.broadcast %cst_7 : f32 to vector<208x128xf32>
    %10 = arith.maximumf %8, %9 : vector<208x128xf32>
    %11 = arith.truncf %10 : vector<208x128xf32> to vector<208x128xbf16>
    %c0_8 = arith.constant 0 : index
    %c0_9 = arith.constant 0 : index
    %c0_10 = arith.constant 0 : index
    %12 = vector.load %arg4[%c0_8, %c0_9, %c0_10] : memref<6x104x208xbf16, #tpu.memory_space<vmem>>, vector<1x104x208xbf16>
    %13 = vector.shape_cast %12 : vector<1x104x208xbf16> to vector<104x208xbf16>
    %cst_11 = arith.constant dense<0.000000e+00> : vector<104x128xf32>
    %14 = tpu.matmul %13, %11, %cst_11 {dimension_numbers = #tpu.dot_dimension_numbers<[1], [0], [0], [1], [0, 0, 1, 1], [], []>} : vector<104x208xbf16>, vector<208x128xbf16>, vector<104x128xf32> -> vector<104x128xf32>
    %cst_12 = arith.constant 0.000000e+00 : f32
    %15 = vector.broadcast %cst_12 : f32 to vector<104x128xf32>
    %16 = arith.maximumf %14, %15 : vector<104x128xf32>
    %17 = arith.truncf %16 : vector<104x128xf32> to vector<104x128xbf16>
    %c0_13 = arith.constant 0 : index
    %c0_14 = arith.constant 0 : index
    %c0_15 = arith.constant 0 : index
    %18 = vector.load %arg5[%c0_13, %c0_14, %c0_15] : memref<6x8x104xbf16, #tpu.memory_space<vmem>>, vector<1x8x104xbf16>
    %19 = vector.shape_cast %18 : vector<1x8x104xbf16> to vector<8x104xbf16>
    %cst_16 = arith.constant dense<0.000000e+00> : vector<8x128xf32>
    %20 = tpu.matmul %19, %17, %cst_16 {dimension_numbers = #tpu.dot_dimension_numbers<[1], [0], [0], [1], [0, 0, 1, 1], [], []>} : vector<8x104xbf16>, vector<104x128xbf16>, vector<8x128xf32> -> vector<8x128xf32>
    %21 = arith.addf %3, %20 : vector<8x128xf32>
    %c1 = arith.constant 1 : index
    %c0_17 = arith.constant 0 : index
    %c0_18 = arith.constant 0 : index
    %22 = vector.load %arg3[%c1, %c0_17, %c0_18] : memref<6x8x208xf32, #tpu.memory_space<vmem>>, vector<1x8x208xf32>
    %23 = vector.shape_cast %22 : vector<1x8x208xf32> to vector<8x208xf32>
    %cst_19 = arith.constant dense<0.000000e+00> : vector<208x128xf32>
    %24 = tpu.matmul %23, %5, %cst_19 {dimension_numbers = #tpu.dot_dimension_numbers<[0], [0], [1], [1], [0, 1, 1, 1], [], []>} : vector<8x208xf32>, vector<8x128xf32>, vector<208x128xf32> -> vector<208x128xf32>
    %cst_20 = arith.constant 0.000000e+00 : f32
    %25 = vector.broadcast %cst_20 : f32 to vector<208x128xf32>
    %26 = arith.maximumf %24, %25 : vector<208x128xf32>
    %27 = arith.truncf %26 : vector<208x128xf32> to vector<208x128xbf16>
    %c1_21 = arith.constant 1 : index
    %c0_22 = arith.constant 0 : index
    %c0_23 = arith.constant 0 : index
    %28 = vector.load %arg4[%c1_21, %c0_22, %c0_23] : memref<6x104x208xbf16, #tpu.memory_space<vmem>>, vector<1x104x208xbf16>
    %29 = vector.shape_cast %28 : vector<1x104x208xbf16> to vector<104x208xbf16>
    %cst_24 = arith.constant dense<0.000000e+00> : vector<104x128xf32>
    %30 = tpu.matmul %29, %27, %cst_24 {dimension_numbers = #tpu.dot_dimension_numbers<[1], [0], [0], [1], [0, 0, 1, 1], [], []>} : vector<104x208xbf16>, vector<208x128xbf16>, vector<104x128xf32> -> vector<104x128xf32>
    %cst_25 = arith.constant 0.000000e+00 : f32
    %31 = vector.broadcast %cst_25 : f32 to vector<104x128xf32>
    %32 = arith.maximumf %30, %31 : vector<104x128xf32>
    %33 = arith.truncf %32 : vector<104x128xf32> to vector<104x128xbf16>
    %c1_26 = arith.constant 1 : index
    %c0_27 = arith.constant 0 : index
    %c0_28 = arith.constant 0 : index
    %34 = vector.load %arg5[%c1_26, %c0_27, %c0_28] : memref<6x8x104xbf16, #tpu.memory_space<vmem>>, vector<1x8x104xbf16>
    %35 = vector.shape_cast %34 : vector<1x8x104xbf16> to vector<8x104xbf16>
    %cst_29 = arith.constant dense<0.000000e+00> : vector<8x128xf32>
    %36 = tpu.matmul %35, %33, %cst_29 {dimension_numbers = #tpu.dot_dimension_numbers<[1], [0], [0], [1], [0, 0, 1, 1], [], []>} : vector<8x104xbf16>, vector<104x128xbf16>, vector<8x128xf32> -> vector<8x128xf32>
    %37 = arith.addf %21, %36 : vector<8x128xf32>
    %c2 = arith.constant 2 : index
    %c0_30 = arith.constant 0 : index
    %c0_31 = arith.constant 0 : index
    %38 = vector.load %arg3[%c2, %c0_30, %c0_31] : memref<6x8x208xf32, #tpu.memory_space<vmem>>, vector<1x8x208xf32>
    %39 = vector.shape_cast %38 : vector<1x8x208xf32> to vector<8x208xf32>
    %cst_32 = arith.constant dense<0.000000e+00> : vector<208x128xf32>
    %40 = tpu.matmul %39, %5, %cst_32 {dimension_numbers = #tpu.dot_dimension_numbers<[0], [0], [1], [1], [0, 1, 1, 1], [], []>} : vector<8x208xf32>, vector<8x128xf32>, vector<208x128xf32> -> vector<208x128xf32>
    %cst_33 = arith.constant 0.000000e+00 : f32
    %41 = vector.broadcast %cst_33 : f32 to vector<208x128xf32>
    %42 = arith.maximumf %40, %41 : vector<208x128xf32>
    %43 = arith.truncf %42 : vector<208x128xf32> to vector<208x128xbf16>
    %c2_34 = arith.constant 2 : index
    %c0_35 = arith.constant 0 : index
    %c0_36 = arith.constant 0 : index
    %44 = vector.load %arg4[%c2_34, %c0_35, %c0_36] : memref<6x104x208xbf16, #tpu.memory_space<vmem>>, vector<1x104x208xbf16>
    %45 = vector.shape_cast %44 : vector<1x104x208xbf16> to vector<104x208xbf16>
    %cst_37 = arith.constant dense<0.000000e+00> : vector<104x128xf32>
    %46 = tpu.matmul %45, %43, %cst_37 {dimension_numbers = #tpu.dot_dimension_numbers<[1], [0], [0], [1], [0, 0, 1, 1], [], []>} : vector<104x208xbf16>, vector<208x128xbf16>, vector<104x128xf32> -> vector<104x128xf32>
    %cst_38 = arith.constant 0.000000e+00 : f32
    %47 = vector.broadcast %cst_38 : f32 to vector<104x128xf32>
    %48 = arith.maximumf %46, %47 : vector<104x128xf32>
    %49 = arith.truncf %48 : vector<104x128xf32> to vector<104x128xbf16>
    %c2_39 = arith.constant 2 : index
    %c0_40 = arith.constant 0 : index
    %c0_41 = arith.constant 0 : index
    %50 = vector.load %arg5[%c2_39, %c0_40, %c0_41] : memref<6x8x104xbf16, #tpu.memory_space<vmem>>, vector<1x8x104xbf16>
    %51 = vector.shape_cast %50 : vector<1x8x104xbf16> to vector<8x104xbf16>
    %cst_42 = arith.constant dense<0.000000e+00> : vector<8x128xf32>
    %52 = tpu.matmul %51, %49, %cst_42 {dimension_numbers = #tpu.dot_dimension_numbers<[1], [0], [0], [1], [0, 0, 1, 1], [], []>} : vector<8x104xbf16>, vector<104x128xbf16>, vector<8x128xf32> -> vector<8x128xf32>
    %53 = arith.addf %37, %52 : vector<8x128xf32>
    %c3 = arith.constant 3 : index
    %c0_43 = arith.constant 0 : index
    %c0_44 = arith.constant 0 : index
    %54 = vector.load %arg3[%c3, %c0_43, %c0_44] : memref<6x8x208xf32, #tpu.memory_space<vmem>>, vector<1x8x208xf32>
    %55 = vector.shape_cast %54 : vector<1x8x208xf32> to vector<8x208xf32>
    %cst_45 = arith.constant dense<0.000000e+00> : vector<208x128xf32>
    %56 = tpu.matmul %55, %5, %cst_45 {dimension_numbers = #tpu.dot_dimension_numbers<[0], [0], [1], [1], [0, 1, 1, 1], [], []>} : vector<8x208xf32>, vector<8x128xf32>, vector<208x128xf32> -> vector<208x128xf32>
    %cst_46 = arith.constant 0.000000e+00 : f32
    %57 = vector.broadcast %cst_46 : f32 to vector<208x128xf32>
    %58 = arith.maximumf %56, %57 : vector<208x128xf32>
    %59 = arith.truncf %58 : vector<208x128xf32> to vector<208x128xbf16>
    %c3_47 = arith.constant 3 : index
    %c0_48 = arith.constant 0 : index
    %c0_49 = arith.constant 0 : index
    %60 = vector.load %arg4[%c3_47, %c0_48, %c0_49] : memref<6x104x208xbf16, #tpu.memory_space<vmem>>, vector<1x104x208xbf16>
    %61 = vector.shape_cast %60 : vector<1x104x208xbf16> to vector<104x208xbf16>
    %cst_50 = arith.constant dense<0.000000e+00> : vector<104x128xf32>
    %62 = tpu.matmul %61, %59, %cst_50 {dimension_numbers = #tpu.dot_dimension_numbers<[1], [0], [0], [1], [0, 0, 1, 1], [], []>} : vector<104x208xbf16>, vector<208x128xbf16>, vector<104x128xf32> -> vector<104x128xf32>
    %cst_51 = arith.constant 0.000000e+00 : f32
    %63 = vector.broadcast %cst_51 : f32 to vector<104x128xf32>
    %64 = arith.maximumf %62, %63 : vector<104x128xf32>
    %65 = arith.truncf %64 : vector<104x128xf32> to vector<104x128xbf16>
    %c3_52 = arith.constant 3 : index
    %c0_53 = arith.constant 0 : index
    %c0_54 = arith.constant 0 : index
    %66 = vector.load %arg5[%c3_52, %c0_53, %c0_54] : memref<6x8x104xbf16, #tpu.memory_space<vmem>>, vector<1x8x104xbf16>
    %67 = vector.shape_cast %66 : vector<1x8x104xbf16> to vector<8x104xbf16>
    %cst_55 = arith.constant dense<0.000000e+00> : vector<8x128xf32>
    %68 = tpu.matmul %67, %65, %cst_55 {dimension_numbers = #tpu.dot_dimension_numbers<[1], [0], [0], [1], [0, 0, 1, 1], [], []>} : vector<8x104xbf16>, vector<104x128xbf16>, vector<8x128xf32> -> vector<8x128xf32>
    %69 = arith.addf %53, %68 : vector<8x128xf32>
    %c4 = arith.constant 4 : index
    %c0_56 = arith.constant 0 : index
    %c0_57 = arith.constant 0 : index
    %70 = vector.load %arg3[%c4, %c0_56, %c0_57] : memref<6x8x208xf32, #tpu.memory_space<vmem>>, vector<1x8x208xf32>
    %71 = vector.shape_cast %70 : vector<1x8x208xf32> to vector<8x208xf32>
    %cst_58 = arith.constant dense<0.000000e+00> : vector<208x128xf32>
    %72 = tpu.matmul %71, %5, %cst_58 {dimension_numbers = #tpu.dot_dimension_numbers<[0], [0], [1], [1], [0, 1, 1, 1], [], []>} : vector<8x208xf32>, vector<8x128xf32>, vector<208x128xf32> -> vector<208x128xf32>
    %cst_59 = arith.constant 0.000000e+00 : f32
    %73 = vector.broadcast %cst_59 : f32 to vector<208x128xf32>
    %74 = arith.maximumf %72, %73 : vector<208x128xf32>
    %75 = arith.truncf %74 : vector<208x128xf32> to vector<208x128xbf16>
    %c4_60 = arith.constant 4 : index
    %c0_61 = arith.constant 0 : index
    %c0_62 = arith.constant 0 : index
    %76 = vector.load %arg4[%c4_60, %c0_61, %c0_62] : memref<6x104x208xbf16, #tpu.memory_space<vmem>>, vector<1x104x208xbf16>
    %77 = vector.shape_cast %76 : vector<1x104x208xbf16> to vector<104x208xbf16>
    %cst_63 = arith.constant dense<0.000000e+00> : vector<104x128xf32>
    %78 = tpu.matmul %77, %75, %cst_63 {dimension_numbers = #tpu.dot_dimension_numbers<[1], [0], [0], [1], [0, 0, 1, 1], [], []>} : vector<104x208xbf16>, vector<208x128xbf16>, vector<104x128xf32> -> vector<104x128xf32>
    %cst_64 = arith.constant 0.000000e+00 : f32
    %79 = vector.broadcast %cst_64 : f32 to vector<104x128xf32>
    %80 = arith.maximumf %78, %79 : vector<104x128xf32>
    %81 = arith.truncf %80 : vector<104x128xf32> to vector<104x128xbf16>
    %c4_65 = arith.constant 4 : index
    %c0_66 = arith.constant 0 : index
    %c0_67 = arith.constant 0 : index
    %82 = vector.load %arg5[%c4_65, %c0_66, %c0_67] : memref<6x8x104xbf16, #tpu.memory_space<vmem>>, vector<1x8x104xbf16>
    %83 = vector.shape_cast %82 : vector<1x8x104xbf16> to vector<8x104xbf16>
    %cst_68 = arith.constant dense<0.000000e+00> : vector<8x128xf32>
    %84 = tpu.matmul %83, %81, %cst_68 {dimension_numbers = #tpu.dot_dimension_numbers<[1], [0], [0], [1], [0, 0, 1, 1], [], []>} : vector<8x104xbf16>, vector<104x128xbf16>, vector<8x128xf32> -> vector<8x128xf32>
    %85 = arith.addf %69, %84 : vector<8x128xf32>
    %c5 = arith.constant 5 : index
    %c0_69 = arith.constant 0 : index
    %c0_70 = arith.constant 0 : index
    %86 = vector.load %arg3[%c5, %c0_69, %c0_70] : memref<6x8x208xf32, #tpu.memory_space<vmem>>, vector<1x8x208xf32>
    %87 = vector.shape_cast %86 : vector<1x8x208xf32> to vector<8x208xf32>
    %cst_71 = arith.constant dense<0.000000e+00> : vector<208x128xf32>
    %88 = tpu.matmul %87, %5, %cst_71 {dimension_numbers = #tpu.dot_dimension_numbers<[0], [0], [1], [1], [0, 1, 1, 1], [], []>} : vector<8x208xf32>, vector<8x128xf32>, vector<208x128xf32> -> vector<208x128xf32>
    %cst_72 = arith.constant 0.000000e+00 : f32
    %89 = vector.broadcast %cst_72 : f32 to vector<208x128xf32>
    %90 = arith.maximumf %88, %89 : vector<208x128xf32>
    %91 = arith.truncf %90 : vector<208x128xf32> to vector<208x128xbf16>
    %c5_73 = arith.constant 5 : index
    %c0_74 = arith.constant 0 : index
    %c0_75 = arith.constant 0 : index
    %92 = vector.load %arg4[%c5_73, %c0_74, %c0_75] : memref<6x104x208xbf16, #tpu.memory_space<vmem>>, vector<1x104x208xbf16>
    %93 = vector.shape_cast %92 : vector<1x104x208xbf16> to vector<104x208xbf16>
    %cst_76 = arith.constant dense<0.000000e+00> : vector<104x128xf32>
    %94 = tpu.matmul %93, %91, %cst_76 {dimension_numbers = #tpu.dot_dimension_numbers<[1], [0], [0], [1], [0, 0, 1, 1], [], []>} : vector<104x208xbf16>, vector<208x128xbf16>, vector<104x128xf32> -> vector<104x128xf32>
    %cst_77 = arith.constant 0.000000e+00 : f32
    %95 = vector.broadcast %cst_77 : f32 to vector<104x128xf32>
    %96 = arith.maximumf %94, %95 : vector<104x128xf32>
    %97 = arith.truncf %96 : vector<104x128xf32> to vector<104x128xbf16>
    %c5_78 = arith.constant 5 : index
    %c0_79 = arith.constant 0 : index
    %c0_80 = arith.constant 0 : index
    %98 = vector.load %arg5[%c5_78, %c0_79, %c0_80] : memref<6x8x104xbf16, #tpu.memory_space<vmem>>, vector<1x8x104xbf16>
    %99 = vector.shape_cast %98 : vector<1x8x104xbf16> to vector<8x104xbf16>
    %cst_81 = arith.constant dense<0.000000e+00> : vector<8x128xf32>
    %100 = tpu.matmul %99, %97, %cst_81 {dimension_numbers = #tpu.dot_dimension_numbers<[1], [0], [0], [1], [0, 0, 1, 1], [], []>} : vector<8x104xbf16>, vector<104x128xbf16>, vector<8x128xf32> -> vector<8x128xf32>
    %101 = arith.addf %85, %100 : vector<8x128xf32>
    %c0_82 = arith.constant 0 : index
    %c0_83 = arith.constant 0 : index
    %102 = vector.load %arg6[%c0_82, %c0_83] : memref<1x128xf32, #tpu.memory_space<vmem>>, vector<1x128xf32>
    %103 = vector.extract_strided_slice %101 {offsets = [0, 0], sizes = [1, 128], strides = [1, 1]} : vector<8x128xf32> to vector<1x128xf32>
    %104 = arith.addf %102, %103 : vector<1x128xf32>
    %c0_84 = arith.constant 0 : index
    %c0_85 = arith.constant 0 : index
    %105 = vector.load %arg6[%c0_84, %c0_85] : memref<1x128xf32, #tpu.memory_space<vmem>>, vector<1x128xf32>
    tpu.vector_store %arg6[%c0_84, %c0_85], %104 {strides = array<i32>} : memref<1x128xf32, #tpu.memory_space<vmem>>, vector<1x128xf32>,
    return
  }
  func.func @transform_0(%arg0: i32, %arg1: i32) -> (i32, i32, i32) {
    %c0_i32 = arith.constant 0 : i32
    %c0_i32_0 = arith.constant 0 : i32
    return %arg1, %c0_i32, %arg0 : i32, i32, i32
  }
  func.func @transform_1(%arg0: i32, %arg1: i32) -> (i32, i32, i32) {
    %c0_i32 = arith.constant 0 : i32
    %c0_i32_0 = arith.constant 0 : i32
    %c0_i32_1 = arith.constant 0 : i32
    return %arg1, %c0_i32, %c0_i32_0 : i32, i32, i32
  }
  func.func @transform_2(%arg0: i32, %arg1: i32) -> (i32, i32, i32) {
    %c0_i32 = arith.constant 0 : i32
    %c0_i32_0 = arith.constant 0 : i32
    %c0_i32_1 = arith.constant 0 : i32
    return %arg1, %c0_i32, %c0_i32_0 : i32, i32, i32
  }
  func.func @transform_3(%arg0: i32, %arg1: i32) -> (i32, i32, i32) {
    %c0_i32 = arith.constant 0 : i32
    %c0_i32_0 = arith.constant 0 : i32
    %c0_i32_1 = arith.constant 0 : i32
    return %arg1, %c0_i32, %c0_i32_0 : i32, i32, i32
  }
  func.func @transform_4(%arg0: i32, %arg1: i32) -> (i32, i32) {
    %c0_i32 = arith.constant 0 : i32
    %c0_i32_0 = arith.constant 0 : i32
    return %c0_i32, %arg0 : i32, i32
  }
}

</mosaic_0001>

<bundles_post_ra>
// kernel: tpu_custom_call.1
= control target key start
LH: loop header
LB: loop body
LE: loop exit
PB: predicated region body
PF: predicated region fallthrough
CT: control target
= control target key end

     0   :  { %9 = vsyncpa [#allocation3], 0  ;;  %s5531_s0 = inlined_call_operand.hbm [shape: f32[1,8,128], index: 0, kind: input, shape index: {}]   ;;  %s5532_s1 = inlined_call_operand.hbm [shape: f32[6,8,208], index: 1, kind: input, shape index: {}]   ;;  %s5533_s2 = inlined_call_operand.hbm [shape: bf16[6,104,208], index: 2, kind: input, shape index: {}]   ;;  %s5534_s3 = inlined_call_operand.hbm [shape: bf16[6,8,104], index: 3, kind: input, shape index: {}]   ;;  %s5535_s4 = inlined_call_operand.hbm [shape: f32[1,128], index: 4, kind: output, shape index: {}]  }
   0x1   :  { %10 = vsyncpa [#allocation6], 0 }
   0x2   :  { %11 = vsyncpa [#allocation9], 0 }
   0x3   :  { %12 = vsyncpa [#allocation4], 0  ;;  %s4979_s15 = smov [#allocation5]  }
   0x4   :  { %s28_s16 = sshll.u32 %s4979_s15, 4  ;;  %s29_s16 = int_to_ptr.vmem [resolvable:$true] %s28_s16 }
   0x5   :  { %s4879_s17 = scalar_lea.vmem %s29_s16, 1536  ;;  %p4884_p1 = scmp.lt.s32.totalorder %s29_s16, %s29_s16 }
   0x6   :  { %p4880_p0 = scmp.ne.s32.totalorder %s29_s16, %s4879_s17  ;;  %p4885_p2 = scmp.lt.s32.totalorder %s4879_s17, %s4879_s17 }
   0x8   :  { %p4886_p3 = por %p4885_p2, %p4884_p1 }
   0xa   :  { %p4887_p4 = pnand %p4886_p3, %p4880_p0 }
   0xc   :  { %4890 = shalt.err (!%p4887_p4)
}
   0xd   :  { %s4980_s18 = smov 256   ;;  %s4981_s19 = smov 16  }
   0xe   :  { %34 = dma.hbm_to_vmem [thread:$0]  %s5532_s1, 1536, %s29_s16, [#allocation6], %s4980_s18, %s4980_s18, %s4981_s19  }
   0xf   :  { %s4982_s22 = smov [#allocation2]   ;;  %s4983_s24 = smov [#allocation7]  }
  0x10   :  { %s19_s23 = sshll.u32 %s4982_s22, 4  ;;  %s40_s25 = sshll.u32 %s4983_s24, 4  ;;  %s20_s23 = int_to_ptr.vmem [resolvable:$true] %s19_s23  ;;  %s41_s25 = int_to_ptr.vmem [resolvable:$true] %s40_s25 }
  0x11   :  { %s4899_s26 = scalar_lea.vmem %s20_s23, 128  ;;  %p4904_p6 = scmp.lt.s32.totalorder %s20_s23, %s20_s23 }
  0x12   :  { %p4900_p5 = scmp.ne.s32.totalorder %s20_s23, %s4899_s26  ;;  %p4905_p7 = scmp.lt.s32.totalorder %s4899_s26, %s4899_s26 }
  0x14   :  { %p4906_p8 = por %p4905_p7, %p4904_p6 }
  0x16   :  { %p4907_p9 = pnand %p4906_p8, %p4900_p5 }
  0x18   :  { %4910 = shalt.err (!%p4907_p9)
}
  0x19   :  { %22 = dma.hbm_to_vmem [thread:$0]  %s5531_s0, 128, %s20_s23, [#allocation3]  }
  0x1a   :  { %s4919_s29 = scalar_lea.vmem %s41_s25, 9984  ;;  %p4924_p11 = scmp.lt.s32.totalorder %s41_s25, %s41_s25 }
  0x1b   :  { %p4920_p10 = scmp.ne.s32.totalorder %s41_s25, %s4919_s29  ;;  %p4925_p12 = scmp.lt.s32.totalorder %s4919_s29, %s4919_s29 }
  0x1d   :  { %p4926_p13 = por %p4925_p12, %p4924_p11 }
  0x1f   :  { %p4927_p0 = pnand %p4926_p13, %p4920_p10 }
  0x21   :  { %4930 = shalt.err (!%p4927_p0)
}
  0x22   :  { %s4984_s1 = smov 128   ;;  %s4985_s30 = smov 8  }
  0x23   :  { %46 = dma.hbm_to_vmem [thread:$0]  %s5533_s2, 9984, %s41_s25, [#allocation6], %s4984_s1, %s4984_s1, %s4985_s30  }
  0x24   :  { %s4986_s7 = smov [#allocation8]  }
  0x25   :  { %s52_s8 = sshll.u32 %s4986_s7, 4  ;;  %s53_s8 = int_to_ptr.vmem [resolvable:$true] %s52_s8 }
  0x26   :  { %s4939_s9 = scalar_lea.vmem %s53_s8, 384  ;;  %p4944_p2 = scmp.lt.s32.totalorder %s53_s8, %s53_s8 }
  0x27   :  { %p4940_p1 = scmp.ne.s32.totalorder %s53_s8, %s4939_s9  ;;  %p4945_p3 = scmp.lt.s32.totalorder %s4939_s9, %s4939_s9 }
  0x29   :  { %p4946_p4 = por %p4945_p3, %p4944_p2 }
  0x2b   :  { %p4947_p5 = pnand %p4946_p4, %p4940_p1 }
  0x2d   :  { %4950 = shalt.err (!%p4947_p5)
}
  0x2e   :  { %s4987_s0 = smov 64   ;;  %s4988_s10 = smov 4  }
  0x2f   :  { %58 = dma.hbm_to_vmem [thread:$0]  %s5534_s3, 384, %s53_s8, [#allocation9], %s4987_s0, %s4987_s0, %s4988_s10  }
  0x30   :  { %4971 = dma.done.wait [#allocation3], 128  }
  0x31   :  { %4972 = vsyncadd [#allocation3], 4294967168 }
  0x32   :  { %4973 = dma.done.wait [#allocation6], 11520  }
  0x33   :  { %4974 = vsyncadd [#allocation6], 4294955776 }
  0x34   :  { %4975 = dma.done.wait [#allocation9], 384  }
  0x35   :  { %4976 = vsyncadd [#allocation9], 4294966912  ;;  %v78_v0 = vld [vmem:[#allocation5] sm:$0xff]  ;;  %v662_v1 = vld [vmem:[#allocation5 + $0x10] sm:$0xff]  ;;  %vm144_vm0 = vcmask 64512   ;;  %v4989_v53 = vmov 0  }
  0x36   :  { %80 = vxpose.xlu0.b32.start.end [1/1] (short) %v78_v0, 128  ;;  %664 = vxpose.xlu1.b32.start.end [1/1] (short) %v662_v1, 128  ;;  %v77_v2 = vld [vmem:[#allocation2] sm:$0xff]  ;;  %v79_v3 = vld [vmem:[#allocation5 + $0x8] sm:$0xff]  ;;  %vm530_vm1 = vcmask 654336   ;;  %vm4991_vm2 = vmmov 0   ;;  %vm1249_vm3 = vcmask 1043456   ;;  %vm1245_vm4 = vcmask 850944  }
  0x37   :  { %4381 = vmatprep.subr.mxu0 %v77_v2  ;;  %v663_v4 = vld [vmem:[#allocation5 + $0x18] sm:$0xff]  ;;  %552 = vmatprep.subr.bf16.mxu1 %v4989_v53  ;;  %s4992_s2 = smov [#allocation10]  }
  0x38   :  { %4382 = vmatpush3.msra.mxu0 %v77_v2  ;;  %s3872_s3 = sshll.u32 %s4992_s2, 4  ;;  %s3873_s3 = int_to_ptr.vmem [resolvable:$true] %s3872_s3 }
  0x39   :  { %4422 = vmatprep.subr.mxu0 %v77_v2  ;;  %s4951_s13 = scalar_lea.vmem %s3873_s3, 16  ;;  %s4955_s14 = scalar_lea.vmem %s3873_s3, 32 }
  0x3a   :  { %p4952_p6 = scmp.ne.s32.totalorder %s3873_s3, %s4951_s13  ;;  %p4956_p7 = scmp.lt.s32.totalorder %s3873_s3, %s3873_s3 }
  0x3b   :  { %p4957_p8 = scmp.lt.s32.totalorder %s4955_s14, %s4951_s13 }
  0x3d   :  { %p4958_p9 = por %p4957_p8, %p4956_p7 }
  0x3f   :  { %p4959_p10 = pnand %p4958_p9, %p4952_p6 }
  0x73   :  { %112 = vxpose.xlu0.b32.start.end [1/1] (short) (narrow) %v79_v3, 80  ;;  %696 = vxpose.xlu1.b32.start.end [1/1] (short) (narrow) %v663_v4, 80 }
  0xb2   :  { %v96_v5 = vpop.trf.xlu0  ;;  %v5030_v6 = vpop.trf.xlu1 }
  0xb3   :  { %4383 = vmatprep.mubr.msk.f32.mxu0 %vm144_vm0, %v96_v5 }
  0xb6   :  { %v97_v7 = vpop.trf.xlu0  ;;  %v5034_v8 = vpop.trf.xlu1 }
  0xb7   :  { %4384 = vmatmul.mubr.msk.f32.vlgmr.msra.gmra.mxu0 %vm144_vm0, %v97_v7 }
  0xb8   :  { %4423 = vmatpush3.msra.mxu0 %v77_v2 }
  0xb9   :  { %1135 = vmatprep.subr.bf16.mxu0 %v4989_v53 }
  0xba   :  { %v98_v9 = vpop.trf.xlu0  ;;  %v5037_v11 = vpop.trf.xlu1 }
  0xbb   :  { %4386 = vmatprep.mubr.msk.f32.mxu0 %vm144_vm0, %v98_v9 }
  0xbe   :  { %v99_v10 = vpop.trf.xlu0  ;;  %v683_v13 = vpop.trf.xlu1 }
  0xbf   :  { %4387 = vmatmul.mubr.msk.f32.gmra.mxu0 %vm144_vm0, %v99_v10 }
  0xc2   :  { %v100_v12 = vpop.trf.xlu0  ;;  %v684_v16 = vpop.trf.xlu1 }
  0xc3   :  { %4389 = vmatprep.mubr.msk.f32.mxu0 %vm144_vm0, %v100_v12 }
  0xc6   :  { %v101_v14 = vpop.trf.xlu0  ;;  %v685_v18 = vpop.trf.xlu1 }
  0xc7   :  { %4390 = vmatmul.mubr.msk.f32.gmra.mxu0 %vm144_vm0, %v101_v14 }
  0xca   :  { %v102_v15 = vpop.trf.xlu0  ;;  %v686_v21 = vpop.trf.xlu1 }
  0xcb   :  { %4392 = vmatprep.mubr.msk.f32.mxu0 %vm144_vm0, %v102_v15 }
  0xce   :  { %v103_v17 = vpop.trf.xlu0  ;;  %v687_v23 = vpop.trf.xlu1 }
  0xcf   :  { %4393 = vmatmul.mubr.msk.f32.gmra.mxu0 %vm144_vm0, %v103_v17 }
  0xd2   :  { %v104_v19 = vpop.trf.xlu0  ;;  %v688_v26 = vpop.trf.xlu1 }
  0xd3   :  { %4395 = vmatprep.mubr.msk.f32.mxu0 %vm144_vm0, %v104_v19 }
  0xd6   :  { %v105_v20 = vpop.trf.xlu0  ;;  %v689_v28 = vpop.trf.xlu1 }
  0xd7   :  { %4396 = vmatmul.mubr.msk.f32.gmra.mxu0 %vm144_vm0, %v105_v20 }
  0xda   :  { %v106_v22 = vpop.trf.xlu0  ;;  %v690_v31 = vpop.trf.xlu1 }
  0xdb   :  { %4398 = vmatprep.mubr.msk.f32.mxu0 %vm144_vm0, %v106_v22 }
  0xde   :  { %v107_v24 = vpop.trf.xlu0  ;;  %v691_v33 = vpop.trf.xlu1 }
  0xdf   :  { %4399 = vmatmul.mubr.msk.f32.gmra.mxu0 %vm144_vm0, %v107_v24 }
  0xe2   :  { %v108_v25 = vpop.trf.xlu0  ;;  %v692_v36 = vpop.trf.xlu1 }
  0xe3   :  { %4401 = vmatprep.mubr.msk.f32.mxu0 %vm144_vm0, %v108_v25 }
  0xe6   :  { %v109_v27 = vpop.trf.xlu0  ;;  %v693_v38 = vpop.trf.xlu1 }
  0xe7   :  { %4402 = vmatmul.mubr.msk.f32.gmra.mxu0 %vm144_vm0, %v109_v27 }
  0xea   :  { %v110_v29 = vpop.trf.xlu0  ;;  %v694_v41 = vpop.trf.xlu1 }
  0xeb   :  { %4404 = vmatprep.mubr.msk.f32.mxu0 %vm144_vm0, %v110_v29 }
  0xee   :  { %v111_v30 = vpop.trf.xlu0  ;;  %v695_v43 = vpop.trf.xlu1 }
  0xef   :  { %4405 = vmatmul.mubr.msk.f32.gmra.mxu0 %vm144_vm0, %v111_v30 }
  0xf2   :  { %v128_v32 = vpop.trf.xlu0  ;;  %v712_v46 = vpop.trf.xlu1 }
  0xf3   :  { %4407 = vmatprep.mubr.msk.f32.mxu0 %vm144_vm0, %v128_v32 }
  0xf6   :  { %v129_v34 = vpop.trf.xlu0  ;;  %v713_v48 = vpop.trf.xlu1 }
  0xf7   :  { %4408 = vmatmul.mubr.msk.f32.gmra.mxu0 %vm144_vm0, %v129_v34 }
  0xfa   :  { %v130_v35 = vpop.trf.xlu0  ;;  %v714_v49 = vpop.trf.xlu1 }
  0xfb   :  { %4410 = vmatprep.mubr.msk.f32.mxu0 %vm144_vm0, %v130_v35 }
  0xfe   :  { %v131_v37 = vpop.trf.xlu0  ;;  %v715_v50 = vpop.trf.xlu1 }
  0xff   :  { %4411 = vmatmul.mubr.msk.f32.gmra.mxu0 %vm144_vm0, %v131_v37 }
 0x102   :  { %v132_v39 = vpop.trf.xlu0  ;;  %v716_v51 = vpop.trf.xlu1 }
 0x103   :  { %4413 = vmatprep.mubr.msk.f32.mxu0 %vm144_vm0, %v132_v39 }
 0x106   :  { %v133_v40 = vpop.trf.xlu0  ;;  %v717_v52 = vpop.trf.xlu1 }
 0x107   :  { %4414 = vmatmul.mubr.msk.f32.gmra.mxu0 %vm144_vm0, %v133_v40 }
 0x10a   :  { %v134_v42 = vpop.trf.xlu0  ;;  %v718_v54 = vpop.trf.xlu1 }
 0x10b   :  { %4416 = vmatprep.mubr.msk.f32.mxu0 %vm144_vm0, %v134_v42 }
 0x10e   :  { %v135_v44 = vpop.trf.xlu0  ;;  %v719_v55 = vpop.trf.xlu1 }
 0x10f   :  { %4417 = vmatmul.mubr.msk.f32.gmra.mxu0 %vm144_vm0, %v135_v44 }
 0x112   :  { %v136_v45 = vpop.trf.xlu0  ;;  %v720_v56 = vpop.trf.xlu1 }
 0x113   :  { %4419 = vmatprep.mubr.msk.f32.mxu0 %vm144_vm0, %v136_v45 }
 0x116   :  { %v137_v47 = vpop.trf.xlu0  ;;  %v721_v57 = vpop.trf.xlu1 }
 0x117   :  { %4420 = vmatmul.mubr.msk.f32.gmra.mxu0 %vm144_vm0, %v137_v47 }
 0x118   :  { %4424 = vmatprep.mubr.msk.f32.mxu0 %vm144_vm0, %v5030_v6 }
 0x11b   :  { %4425 = vmatmul.mubr.msk.f32.vlgmr.msra.gmra.mxu0 %vm144_vm0, %v5034_v8  ;;  %v4751_v8 = vld [vmem:[#allocation7 + $0x6c] ss:$8 sps:$4 sm:$0xff]  }
 0x11c   :  { %4427 = vmatprep.mubr.msk.f32.mxu0 %vm144_vm0, %v5037_v11 }
 0x11f   :  { %4428 = vmatmul.mubr.msk.f32.gmra.mxu0 %vm144_vm0, %v683_v13 }
 0x120   :  { %4430 = vmatprep.mubr.msk.f32.mxu0 %vm144_vm0, %v684_v16 }
 0x123   :  { %4431 = vmatmul.mubr.msk.f32.gmra.mxu0 %vm144_vm0, %v685_v18 }
 0x124   :  { %4433 = vmatprep.mubr.msk.f32.mxu0 %vm144_vm0, %v686_v21 }
 0x127   :  { %4434 = vmatmul.mubr.msk.f32.gmra.mxu0 %vm144_vm0, %v687_v23 }
 0x128   :  { %4436 = vmatprep.mubr.msk.f32.mxu0 %vm144_vm0, %v688_v26  ;;  %v4762_v26 = vld [vmem:[#allocation7 + $0x4] ss:$8 sps:$4 sm:$0xff]  }
 0x129   :  { %3923 = vmatprep.mubr.msk.bf16.mxu1 %vm530_vm1, %v4762_v26 }
 0x12b   :  { %4437 = vmatmul.mubr.msk.f32.gmra.mxu0 %vm144_vm0, %v689_v28 }
 0x12c   :  { %4439 = vmatprep.mubr.msk.f32.mxu0 %vm144_vm0, %v690_v31 }
 0x12f   :  { %4440 = vmatmul.mubr.msk.f32.gmra.mxu0 %vm144_vm0, %v691_v33 }
 0x130   :  { %4442 = vmatprep.mubr.msk.f32.mxu0 %vm144_vm0, %v692_v36 }
 0x133   :  { %4443 = vmatmul.mubr.msk.f32.gmra.mxu0 %vm144_vm0, %v693_v38 }
 0x134   :  { %4445 = vmatprep.mubr.msk.f32.mxu0 %vm144_vm0, %v694_v41 }
 0x137   :  { %4446 = vmatmul.mubr.msk.f32.gmra.mxu0 %vm144_vm0, %v695_v43 }
 0x138   :  { %4448 = vmatprep.mubr.msk.f32.mxu0 %vm144_vm0, %v712_v46 }
 0x13b   :  { %4449 = vmatmul.mubr.msk.f32.gmra.mxu0 %vm144_vm0, %v713_v48 }
 0x13c   :  { %4451 = vmatprep.mubr.msk.f32.mxu0 %vm144_vm0, %v714_v49 }
 0x13f   :  { %4452 = vmatmul.mubr.msk.f32.gmra.mxu0 %vm144_vm0, %v715_v50 }
 0x140   :  { %4454 = vmatprep.mubr.msk.f32.mxu0 %vm144_vm0, %v716_v51 }
 0x143   :  { %4455 = vmatmul.mubr.msk.f32.gmra.mxu0 %vm144_vm0, %v717_v52 }
 0x144   :  { %4457 = vmatprep.mubr.msk.f32.mxu0 %vm144_vm0, %v718_v54 }
 0x147   :  { %4458 = vmatmul.mubr.msk.f32.gmra.mxu0 %vm144_vm0, %v719_v55 }
 0x148   :  { %4460 = vmatprep.mubr.msk.f32.mxu0 %vm144_vm0, %v720_v56 }
 0x14b   :  { %4461 = vmatmul.mubr.msk.f32.gmra.mxu0 %vm144_vm0, %v721_v57 }
 0x14c   :  { %3970 = vmatprep.mubr.msk.bf16.mxu0 %vm530_vm1, %v4751_v8 }
 0x177   :  { %v5093_v58 = vpop.f32.mrf.mxu0 }
 0x178   :  { %v419_v39 = vmax.f32 %v5093_v58, 0.0 }
 0x179   :  { %v5095_v59 = vpop.f32.mrf.mxu0 }
 0x17a   :  { %v418_v37 = vmax.f32 %v5095_v59, 0.0  ;;  %v1340_v59 = vld [vmem:[#allocation5 + $0x20] sm:$0xff] }
 0x17b   :  { %1342 = vxpose.xlu0.b32.start.end [1/1] (short) %v1340_v59, 128  ;;  %v469_v59 = vld [vmem:[#allocation7 + $0x60] sm:$0xff] }
 0x17c   :  { %v444_v41 = vpack.c.bf16 %v419_v39, %v418_v37 }
 0x17f   :  { %v4388_v60 = vpop.f32.mrf.mxu0 }
 0x180   :  { %v421_v35 = vmax.f32 %v4388_v60, 0.0 }
 0x181   :  { %v299_v61 = vpop.f32.mrf.mxu0 }
 0x182   :  { %v420_v32 = vmax.f32 %v299_v61, 0.0 }
 0x184   :  { %v445_v38 = vpack.c.bf16 %v421_v35, %v420_v32 }
 0x187   :  { %v4391_v62 = vpop.f32.mrf.mxu0 }
 0x188   :  { %v423_v31 = vmax.f32 %v4391_v62, 0.0 }
 0x189   :  { %v309_v63 = vpop.f32.mrf.mxu0 }
 0x18a   :  { %v422_v28 = vmax.f32 %v309_v63, 0.0 }
 0x18c   :  { %v446_v33 = vpack.c.bf16 %v423_v31, %v422_v28 }
 0x18f   :  { %v4394_v0 = vpop.f32.mrf.mxu0 }
 0x190   :  { %v425_v25 = vmax.f32 %v4394_v0, 0.0 }
 0x191   :  { %v319_v1 = vpop.f32.mrf.mxu0 }
 0x192   :  { %v424_v23 = vmax.f32 %v319_v1, 0.0 }
 0x194   :  { %v447_v29 = vpack.c.bf16 %v425_v25, %v424_v23  ;;  %v4775_v25 = vld [vmem:[#allocation7 + $0x20] ss:$8 sps:$4 sm:$0xff]  }
 0x197   :  { %v4397_v2 = vpop.f32.mrf.mxu0 }
 0x198   :  { %v427_v21 = vmax.f32 %v4397_v2, 0.0 }
 0x199   :  { %v329_v3 = vpop.f32.mrf.mxu0 }
 0x19a   :  { %v426_v19 = vmax.f32 %v329_v3, 0.0 }
 0x19c   :  { %v448_v24 = vpack.c.bf16 %v427_v21, %v426_v19 }
 0x19f   :  { %v4400_v4 = vpop.f32.mrf.mxu0 }
 0x1a0   :  { %v429_v18 = vmax.f32 %v4400_v4, 0.0 }
 0x1a1   :  { %v339_v5 = vpop.f32.mrf.mxu0 }
 0x1a2   :  { %v428_v16 = vmax.f32 %v339_v5, 0.0 }
 0x1a4   :  { %v449_v20 = vpack.c.bf16 %v429_v18, %v428_v16  ;;  %v4772_v16 = vld [vmem:[#allocation7 + $0x24] ss:$8 sps:$4 sm:$0xff]  }
 0x1a7   :  { %v4403_v6 = vpop.f32.mrf.mxu0 }
 0x1a8   :  { %v431_v15 = vmax.f32 %v4403_v6, 0.0 }
 0x1a9   :  { %v349_v7 = vpop.f32.mrf.mxu0 }
 0x1aa   :  { %v430_v13 = vmax.f32 %v349_v7, 0.0 }
 0x1ac   :  { %v450_v17 = vpack.c.bf16 %v431_v15, %v430_v13  ;;  %v4769_v15 = vld [vmem:[#allocation7 + $0x10] ss:$8 sps:$4 sm:$0xff]  }
 0x1af   :  { %v4406_v9 = vpop.f32.mrf.mxu0 }
 0x1b0   :  { %v433_v11 = vmax.f32 %v4406_v9, 0.0  ;;  %v4760_v9 = vld [vmem:[#allocation7] ss:$8 sps:$4 sm:$0xff]  }
 0x1b1   :  { %v359_v10 = vpop.f32.mrf.mxu0 }
 0x1b2   :  { %v432_v12 = vmax.f32 %v359_v10, 0.0  ;;  %v4766_v10 = vld [vmem:[#allocation7 + $0x14] ss:$8 sps:$4 sm:$0xff]  }
 0x1b4   :  { %v451_v14 = vpack.c.bf16 %v433_v11, %v432_v12 }
 0x1b6   :  { %553 = vmatpush1.bf16.msra.mxu1 %v451_v14 }
 0x1b7   :  { %554 = vmatprep.subr.bf16.mxu1 %v4989_v53  ;;  %v5100_v22 = vpop.f32.mrf.mxu0 }
 0x1b8   :  { %v435_v5 = vmax.f32 %v5100_v22, 0.0 }
 0x1b9   :  { %v5103_v27 = vpop.f32.mrf.mxu0 }
 0x1ba   :  { %555 = vmatpush1.bf16.msra.mxu1 %v450_v17  ;;  %v434_v2 = vmax.f32 %v5103_v27, 0.0  ;;  %v4777_v27 = vld [vmem:[#allocation7 + $0x34] ss:$8 sps:$4 sm:$0xff]  }
 0x1bb   :  { %556 = vmatprep.subr.bf16.mxu1 %v4989_v53 }
 0x1bc   :  { %v452_v7 = vpack.c.bf16 %v435_v5, %v434_v2  ;;  %v3921_v5 = vcombine.low %v469_v59, %v469_v59 }
 0x1be   :  { %557 = vmatpush1.bf16.msra.mxu1 %v449_v20 }
 0x1bf   :  { %558 = vmatprep.subr.bf16.mxu1 %v4989_v53  ;;  %v4412_v30 = vpop.f32.mrf.mxu0 }
 0x1c0   :  { %v437_v0 = vmax.f32 %v4412_v30, 0.0 }
 0x1c1   :  { %v379_v34 = vpop.f32.mrf.mxu0 }
 0x1c2   :  { %559 = vmatpush1.bf16.msra.mxu1 %v448_v24  ;;  %v436_v61 = vmax.f32 %v379_v34, 0.0 }
 0x1c3   :  { %560 = vmatprep.subr.bf16.mxu1 %v4989_v53 }
 0x1c4   :  { %v453_v3 = vpack.c.bf16 %v437_v0, %v436_v61 }
 0x1c6   :  { %561 = vmatpush1.bf16.msra.mxu1 %v447_v29 }
 0x1c7   :  { %562 = vmatprep.subr.bf16.mxu1 %v4989_v53  ;;  %v4415_v36 = vpop.f32.mrf.mxu0 }
 0x1c8   :  { %v439_v58 = vmax.f32 %v4415_v36, 0.0  ;;  %v4780_v36 = vld [vmem:[#allocation7 + $0x30] ss:$8 sps:$4 sm:$0xff]  }
 0x1c9   :  { %v389_v40 = vpop.f32.mrf.mxu0 }
 0x1ca   :  { %563 = vmatpush1.bf16.msra.mxu1 %v446_v33  ;;  %v438_v55 = vmax.f32 %v389_v40, 0.0 }
 0x1cb   :  { %564 = vmatprep.subr.bf16.mxu1 %v4989_v53 }
 0x1cc   :  { %v454_v62 = vpack.c.bf16 %v439_v58, %v438_v55 }
 0x1ce   :  { %565 = vmatpush1.bf16.msra.mxu1 %v445_v38  ;;  %v4781_v38 = vld [vmem:[#allocation7 + $0x44] ss:$8 sps:$4 sm:$0xff]  }
 0x1cf   :  { %566 = vmatprep.subr.bf16.mxu1 %v4989_v53  ;;  %v4418_v42 = vpop.f32.mrf.mxu0 }
 0x1d0   :  { %v441_v52 = vmax.f32 %v4418_v42, 0.0 }
 0x1d1   :  { %v399_v43 = vpop.f32.mrf.mxu0 }
 0x1d2   :  { %567 = vmatpush1.bf16.msra.mxu1 %v444_v41  ;;  %v440_v49 = vmax.f32 %v399_v43, 0.0 }
 0x1d3   :  { %574 = vmatprep.subr.bf16.mxu1 %v4989_v53 }
 0x1d4   :  { %v455_v56 = vpack.c.bf16 %v441_v52, %v440_v49  ;;  %v4784_v49 = vld [vmem:[#allocation7 + $0x54] ss:$8 sps:$4 sm:$0xff]  }
 0x1d7   :  { %v4421_v44 = vpop.f32.mrf.mxu0 }
 0x1d8   :  { %v443_v46 = vmax.f32 %v4421_v44, 0.0 }
 0x1d9   :  { %v409_v45 = vpop.f32.mrf.mxu0 }
 0x1da   :  { %v442_v47 = vmax.f32 %v409_v45, 0.0 }
 0x1db   :  { %v5113_v48 = vpop.f32.mrf.mxu0 }
 0x1dc   :  { %v456_v50 = vpack.c.bf16 %v443_v46, %v442_v47  ;;  %v4783_v46 = vld [vmem:[#allocation7 + $0x40] ss:$8 sps:$4 sm:$0xff]   ;;  %v1002_v0 = vmax.f32 %v5113_v48, 0.0 }
 0x1dd   :  { %v5115_v51 = vpop.f32.mrf.mxu0 }
 0x1de   :  { %575 = vmatpush2.bf16.msra.mxu1 %v456_v50 }
 0x1df   :  { %v5117_v54 = vpop.f32.mrf.mxu0  ;;  %576 = vmatprep.subr.bf16.mxu1 %v4989_v53 }
 0x1e0   :  { %v1004_v58 = vmax.f32 %v5117_v54, 0.0 }
 0x1e1   :  { %v5120_v57 = vpop.f32.mrf.mxu0 }
 0x1e2   :  { %577 = vmatpush2.bf16.msra.mxu1 %v455_v56  ;;  %v1003_v52 = vmax.f32 %v5120_v57, 0.0  ;;  %v3922_v57 = vcombine.high %v469_v59, %v469_v59 }
 0x1e3   :  { %v5122_v60 = vpop.f32.mrf.mxu0  ;;  %578 = vmatprep.subr.bf16.mxu1 %v4989_v53 }
 0x1e4   :  { %v1006_v47 = vmax.f32 %v5122_v60, 0.0  ;;  %v1001_v60 = vmax.f32 %v5115_v51, 0.0  ;;  %v1028_v61 = vpack.c.bf16 %v1004_v58, %v1003_v52 }
 0x1e5   :  { %v5125_v63 = vpop.f32.mrf.mxu0 }
 0x1e6   :  { %579 = vmatpush2.bf16.msra.mxu1 %v454_v62  ;;  %v1005_v44 = vmax.f32 %v5125_v63, 0.0  ;;  %v4786_v63 = vld [vmem:[#allocation7 + $0x50] ss:$8 sps:$4 sm:$0xff]  }
 0x1e7   :  { %v5127_v1 = vpop.f32.mrf.mxu0  ;;  %580 = vmatprep.subr.bf16.mxu1 %v4989_v53 }
 0x1e8   :  { %v1008_v42 = vmax.f32 %v5127_v1, 0.0  ;;  %v1029_v55 = vpack.c.bf16 %v1006_v47, %v1005_v44  ;;  %v1027_v1 = vpack.c.bf16 %v1002_v0, %v1001_v60 }
 0x1e9   :  { %v902_v4 = vpop.f32.mrf.mxu0 }
 0x1ea   :  { %581 = vmatpush2.bf16.msra.mxu1 %v453_v3  ;;  %v1007_v39 = vmax.f32 %v902_v4, 0.0 }
 0x1eb   :  { %v4438_v6 = vpop.f32.mrf.mxu0  ;;  %582 = vmatprep.subr.bf16.mxu1 %v4989_v53 }
 0x1ec   :  { %v1010_v37 = vmax.f32 %v4438_v6, 0.0  ;;  %v1030_v45 = vpack.c.bf16 %v1008_v42, %v1007_v39 }
 0x1ed   :  { %v912_v8 = vpop.f32.mrf.mxu0 }
 0x1ee   :  { %583 = vmatpush2.bf16.msra.mxu1 %v452_v7  ;;  %v1009_v33 = vmax.f32 %v912_v8, 0.0 }
 0x1ef   :  { %v4441_v11 = vpop.f32.mrf.mxu0 }
 0x1f0   :  { %v1012_v31 = vmax.f32 %v4441_v11, 0.0  ;;  %v1031_v40 = vpack.c.bf16 %v1010_v37, %v1009_v33 }
 0x1f1   :  { %v922_v12 = vpop.f32.mrf.mxu0  ;;  %585 = vmatmul.mubr.bf16.vlgmr.msra.gmra.mxu1 %v4760_v9 }
 0x1f2   :  { %3924 = vmatprep.mubr.msk.bf16.mxu1 %vm530_vm1, %v4766_v10  ;;  %v1011_v29 = vmax.f32 %v922_v12, 0.0 }
 0x1f3   :  { %v4444_v13 = vpop.f32.mrf.mxu0 }
 0x1f4   :  { %v1014_v26 = vmax.f32 %v4444_v13, 0.0  ;;  %v1032_v34 = vpack.c.bf16 %v1012_v31, %v1011_v29  ;;  %v1341_v29 = vld [vmem:[#allocation5 + $0x28] sm:$0xff] }
 0x1f5   :  { %v932_v14 = vpop.f32.mrf.mxu0  ;;  %1374 = vxpose.xlu1.b32.start.end [1/1] (short) (narrow) %v1341_v29, 80 }
 0x1f6   :  { %v1013_v22 = vmax.f32 %v932_v14, 0.0 }
 0x1f7   :  { %v4447_v17 = vpop.f32.mrf.mxu0 }
 0x1f8   :  { %v1016_v19 = vmax.f32 %v4447_v17, 0.0  ;;  %v1033_v30 = vpack.c.bf16 %v1014_v26, %v1013_v22  ;;  %v4754_v17 = vld [vmem:[#allocation7 + $0x78] ss:$8 sps:$4 sm:$0xff]   ;;  %v4764_v22 = vld [vmem:[#allocation7 + $0xac] ss:$8 sps:$4 sm:$0xff]  }
 0x1f9   :  { %v942_v18 = vpop.f32.mrf.mxu0  ;;  %593 = vmatmul.mubr.bf16.gmra.mxu1 %v4769_v15  ;;  %v4749_v15 = vld [vmem:[#allocation7 + $0x68] ss:$8 sps:$4 sm:$0xff]   ;;  %v4774_v26 = vld [vmem:[#allocation7 + $0xb8] ss:$8 sps:$4 sm:$0xff]  }
 0x1fa   :  { %v1015_v20 = vmax.f32 %v942_v18, 0.0  ;;  %3925 = vmatprep.mubr.msk.bf16.mxu1 %vm530_vm1, %v4772_v16  ;;  %v4752_v16 = vld [vmem:[#allocation7 + $0x7c] ss:$8 sps:$4 sm:$0xff]   ;;  %v4755_v18 = vld [vmem:[#allocation7 + $0x8c] ss:$8 sps:$4 sm:$0xff]  }
 0x1fb   :  { %v5135_v21 = vpop.f32.mrf.mxu0 }
 0x1fc   :  { %v1034_v23 = vpack.c.bf16 %v1016_v19, %v1015_v20  ;;  %v1018_v13 = vmax.f32 %v5135_v21, 0.0  ;;  %v4757_v19 = vld [vmem:[#allocation7 + $0x88] ss:$8 sps:$4 sm:$0xff]   ;;  %v4758_v20 = vld [vmem:[#allocation7 + $0x9c] ss:$8 sps:$4 sm:$0xff]  }
 0x1fd   :  { %v5137_v24 = vpop.f32.mrf.mxu0  ;;  %v4763_v21 = vld [vmem:[#allocation7 + $0x98] ss:$8 sps:$4 sm:$0xff]  }
 0x1fe   :  { %1136 = vmatpush1.bf16.msra.mxu0 %v1034_v23  ;;  %v1017_v11 = vmax.f32 %v5137_v24, 0.0  ;;  %v4768_v23 = vld [vmem:[#allocation7 + $0xa8] ss:$8 sps:$4 sm:$0xff]   ;;  %v4770_v24 = vld [vmem:[#allocation7 + $0xbc] ss:$8 sps:$4 sm:$0xff]  }
 0x1ff   :  { %v5139_v28 = vpop.f32.mrf.mxu0  ;;  %1137 = vmatprep.subr.bf16.mxu0 %v4989_v53 }
 0x200   :  { %v1020_v10 = vmax.f32 %v5139_v28, 0.0  ;;  %v1035_v14 = vpack.c.bf16 %v1018_v13, %v1017_v11 }
 0x201   :  { %601 = vmatmul.mubr.bf16.gmra.mxu1 %v4775_v25  ;;  %v5143_v32 = vpop.f32.mrf.mxu0  ;;  %v1053_v25 = vld [vmem:[#allocation7 + $0xc8] sm:$0xff] }
 0x202   :  { %1138 = vmatpush1.bf16.msra.mxu0 %v1033_v30  ;;  %3926 = vmatprep.mubr.msk.bf16.mxu1 %vm530_vm1, %v4777_v27  ;;  %v1019_v8 = vmax.f32 %v5143_v32, 0.0  ;;  %v3969_v27 = vcombine.high %v1053_v25, %v1053_v25  ;;  %v3968_v28 = vcombine.low %v1053_v25, %v1053_v25  ;;  %v4990_v30 = vmov 0.0  }
 0x203   :  { %1139 = vmatprep.subr.bf16.mxu0 %v4989_v53  ;;  %v4456_v35 = vpop.f32.mrf.mxu0  ;;  %4463 = vmatprep.subr.bf16.mxu1 %v4990_v30  ;;  %76 = vst [vmem:[#allocation10] sm:$0x1] %v4990_v30 }
 0x204   :  { %v1022_v48 = vmax.f32 %v4456_v35, 0.0  ;;  %v1036_v12 = vpack.c.bf16 %v1020_v10, %v1019_v8 }
 0x205   :  { %v972_v41 = vpop.f32.mrf.mxu0 }
 0x206   :  { %1140 = vmatpush1.bf16.msra.mxu0 %v1032_v34  ;;  %v1021_v6 = vmax.f32 %v972_v41, 0.0 }
 0x207   :  { %1141 = vmatprep.subr.bf16.mxu0 %v4989_v53  ;;  %v4459_v43 = vpop.f32.mrf.mxu0 }
 0x208   :  { %v1024_v3 = vmax.f32 %v4459_v43, 0.0  ;;  %v1037_v9 = vpack.c.bf16 %v1022_v48, %v1021_v6 }
 0x209   :  { %609 = vmatmul.mubr.bf16.gmra.mxu1 %v4780_v36  ;;  %v982_v50 = vpop.f32.mrf.mxu0 }
 0x20a   :  { %1142 = vmatpush1.bf16.msra.mxu0 %v1031_v40  ;;  %3927 = vmatprep.mubr.msk.bf16.mxu1 %vm530_vm1, %v4781_v38  ;;  %v1023_v51 = vmax.f32 %v982_v50, 0.0 }
 0x20b   :  { %1143 = vmatprep.subr.bf16.mxu0 %v4989_v53  ;;  %v4462_v56 = vpop.f32.mrf.mxu0 }
 0x20c   :  { %v1026_v2 = vmax.f32 %v4462_v56, 0.0  ;;  %v1038_v7 = vpack.c.bf16 %v1024_v3, %v1023_v51 }
 0x20d   :  { %v992_v62 = vpop.f32.mrf.mxu0 }
 0x20e   :  { %1144 = vmatpush1.bf16.msra.mxu0 %v1030_v45  ;;  %v1025_v54 = vmax.f32 %v992_v62, 0.0 }
 0x20f   :  { %1145 = vmatprep.subr.bf16.mxu0 %v4989_v53 }
 0x210   :  { %v1039_v4 = vpack.c.bf16 %v1026_v2, %v1025_v54 }
 0x211   :  { %617 = vmatmul.mubr.bf16.gmra.mxu1 %v4783_v46 }
 0x212   :  { %1146 = vmatpush1.bf16.msra.mxu0 %v1029_v55  ;;  %3928 = vmatprep.mubr.msk.bf16.mxu1 %vm530_vm1, %v4784_v49 }
 0x213   :  { %1147 = vmatprep.subr.bf16.mxu0 %v4989_v53 }
 0x216   :  { %1148 = vmatpush1.bf16.msra.mxu0 %v1028_v61 }
 0x217   :  { %1149 = vmatprep.subr.bf16.mxu0 %v4989_v53 }
 0x219   :  { %625 = vmatmul.mubr.bf16.gmra.mxu1 %v4786_v63 }
 0x21a   :  { %1150 = vmatpush1.bf16.msra.mxu0 %v1027_v1  ;;  %3929 = vmatprep.mubr.msk.bf16.mxu1 %vm530_vm1, %v3922_v57 }
 0x21b   :  { %1157 = vmatprep.subr.bf16.mxu0 %v4989_v53 }
 0x21e   :  { %1158 = vmatpush2.bf16.msra.mxu0 %v1039_v4 }
 0x21f   :  { %1159 = vmatprep.subr.bf16.mxu0 %v4989_v53 }
 0x221   :  { %633 = vmatmul.mubr.bf16.gmra.mxu1 %v3921_v5 }
 0x222   :  { %1160 = vmatpush2.bf16.msra.mxu0 %v1038_v7  ;;  %4477 = vmatprep.mubr.msk.bf16.mxu1 %vm4991_vm2, %v4990_v30 }
 0x223   :  { %1161 = vmatprep.subr.bf16.mxu0 %v4989_v53 }
 0x226   :  { %1162 = vmatpush2.bf16.msra.mxu0 %v1037_v9 }
 0x227   :  { %1163 = vmatprep.subr.bf16.mxu0 %v4989_v53 }
 0x22a   :  { %1164 = vmatpush2.bf16.msra.mxu0 %v1036_v12 }
 0x22b   :  { %1165 = vmatprep.subr.bf16.mxu0 %v4989_v53 }
 0x22e   :  { %1166 = vmatpush2.bf16.msra.mxu0 %v1035_v14 }
 0x22f   :  { %1813 = vmatprep.subr.bf16.mxu0 %v4989_v53 }
 0x231   :  { %1168 = vmatmul.mubr.bf16.vlgmr.msra.gmra.mxu0 %v4749_v15 }
 0x232   :  { %3971 = vmatprep.mubr.msk.bf16.mxu0 %vm530_vm1, %v4752_v16 }
 0x239   :  { %1176 = vmatmul.mubr.bf16.gmra.mxu0 %v4754_v17 }
 0x23a   :  { %3972 = vmatprep.mubr.msk.bf16.mxu0 %vm530_vm1, %v4755_v18 }
 0x241   :  { %1184 = vmatmul.mubr.bf16.gmra.mxu0 %v4757_v19 }
 0x242   :  { %3973 = vmatprep.mubr.msk.bf16.mxu0 %vm530_vm1, %v4758_v20 }
 0x249   :  { %1192 = vmatmul.mubr.bf16.gmra.mxu0 %v4763_v21 }
 0x24a   :  { %3974 = vmatprep.mubr.msk.bf16.mxu0 %vm530_vm1, %v4764_v22 }
 0x251   :  { %1200 = vmatmul.mubr.bf16.gmra.mxu0 %v4768_v23 }
 0x252   :  { %3975 = vmatprep.mubr.msk.bf16.mxu0 %vm530_vm1, %v4770_v24 }
 0x259   :  { %1208 = vmatmul.mubr.bf16.gmra.mxu0 %v4774_v26 }
 0x25a   :  { %3976 = vmatprep.mubr.msk.bf16.mxu0 %vm530_vm1, %v3969_v27 }
 0x261   :  { %1216 = vmatmul.mubr.bf16.gmra.mxu0 %v3968_v28 }
 0x2b1   :  { %v586_v31 = vpop.f32.mrf.mxu1 }
 0x2b2   :  { %v640_v33 = vmax.f32 %v586_v31, 0.0 }
 0x2b3   :  { %v588_v32 = vpop.f32.mrf.mxu1 }
 0x2b5   :  { %v589_v34 = vpop.f32.mrf.mxu1 }
 0x2b6   :  { %v641_v35 = vmax.f32 %v589_v34, 0.0 }
 0x2b7   :  { %v591_v36 = vpop.f32.mrf.mxu1 }
 0x2b8   :  { %v5179_v37 = vpack.c.bf16 %v641_v35, %v640_v33 }
 0x2b9   :  { %v594_v38 = vpop.f32.mrf.mxu1 }
 0x2ba   :  { %v642_v40 = vmax.f32 %v594_v38, 0.0 }
 0x2bb   :  { %v596_v39 = vpop.f32.mrf.mxu1 }
 0x2bd   :  { %v597_v41 = vpop.f32.mrf.mxu1 }
 0x2be   :  { %v643_v42 = vmax.f32 %v597_v41, 0.0 }
 0x2bf   :  { %v599_v43 = vpop.f32.mrf.mxu1 }
 0x2c0   :  { %v5181_v44 = vpack.c.bf16 %v643_v42, %v642_v40 }
 0x2c1   :  { %v602_v45 = vpop.f32.mrf.mxu1 }
 0x2c2   :  { %v644_v47 = vmax.f32 %v602_v45, 0.0 }
 0x2c3   :  { %v604_v46 = vpop.f32.mrf.mxu1 }
 0x2c5   :  { %v605_v49 = vpop.f32.mrf.mxu1 }
 0x2c6   :  { %v645_v50 = vmax.f32 %v605_v49, 0.0 }
 0x2c7   :  { %v607_v52 = vpop.f32.mrf.mxu1 }
 0x2c8   :  { %v5185_v55 = vpack.c.bf16 %v645_v50, %v644_v47  ;;  %v5195_v52 = vpop.trf.xlu0 }
 0x2c9   :  { %v610_v56 = vpop.f32.mrf.mxu1 }
 0x2ca   :  { %v646_v59 = vmax.f32 %v610_v56, 0.0 }
 0x2cb   :  { %v612_v58 = vpop.f32.mrf.mxu1 }
 0x2cd   :  { %v613_v60 = vpop.f32.mrf.mxu1 }
 0x2ce   :  { %v647_v61 = vmax.f32 %v613_v60, 0.0 }
 0x2cf   :  { %v615_v62 = vpop.f32.mrf.mxu1 }
 0x2d0   :  { %v5187_v63 = vpack.c.bf16 %v647_v61, %v646_v59 }
 0x2d1   :  { %v618_v0 = vpop.f32.mrf.mxu1 }
 0x2d2   :  { %v648_v1 = vmax.f32 %v618_v0, 0.0  ;;  %v1359_v0 = vpop.trf.xlu0 }
 0x2d3   :  { %v620_v57 = vpop.f32.mrf.mxu1 }
 0x2d5   :  { %v621_v2 = vpop.f32.mrf.mxu1 }
 0x2d6   :  { %v649_v54 = vmax.f32 %v621_v2, 0.0 }
 0x2d7   :  { %v623_v3 = vpop.f32.mrf.mxu1 }
 0x2d8   :  { %v5189_v51 = vpack.c.bf16 %v649_v54, %v648_v1 }
 0x2d9   :  { %v626_v4 = vpop.f32.mrf.mxu1 }
 0x2da   :  { %v650_v48 = vmax.f32 %v626_v4, 0.0  ;;  %v1360_v4 = vpop.trf.xlu0 }
 0x2db   :  { %v628_v5 = vpop.f32.mrf.mxu1 }
 0x2dd   :  { %v629_v6 = vpop.f32.mrf.mxu1 }
 0x2de   :  { %v651_v7 = vmax.f32 %v629_v6, 0.0 }
 0x2df   :  { %v631_v8 = vpop.f32.mrf.mxu1 }
 0x2e0   :  { %v5191_v9 = vpack.c.bf16 %v651_v7, %v650_v48  ;;  %v1361_v8 = vpop.trf.xlu0 }
 0x2e1   :  { %v5193_v10 = vpop.f32.mrf.mxu1 }
 0x2e3   :  { %v636_v11 = vpop.f32.mrf.mxu1 }
 0x2e4   :  { %v652_v11 = vmax.f32 %v5193_v10, 0.0 }
 0x2e5   :  { %v637_v12 = vpop.f32.mrf.mxu1 }
 0x2e7   :  { %v638_v13 = vpop.f32.mrf.mxu1 }
 0x2e8   :  { %v659_v13 = vpack.c.bf16 %v652_v11, %v652_v11 }
 0x2f1   :  { %v1169_v14 = vpop.f32.mrf.mxu0 }
 0x2f2   :  { %v1223_v17 = vmax.f32 %v1169_v14, 0.0  ;;  %v1362_v14 = vpop.trf.xlu0 }
 0x2f3   :  { %v1171_v15 = vpop.f32.mrf.mxu0 }
 0x2f4   :  { %v1244_v15 = vld [vmem:[#allocation8 + $0x4] sm:$0xf] }
 0x2f5   :  { %v1172_v16 = vpop.f32.mrf.mxu0 }
 0x2f6   :  { %v1224_v18 = vmax.f32 %v1172_v16, 0.0  ;;  %v1297_v16 = vsel %vm1249_vm3, %v659_v13, 0 }
 0x2f7   :  { %v1174_v19 = vpop.f32.mrf.mxu0 }
 0x2f8   :  { %v1236_v20 = vpack.c.bf16 %v1224_v18, %v1223_v17  ;;  %v1363_v17 = vpop.trf.xlu0 }
 0x2f9   :  { %v1177_v21 = vpop.f32.mrf.mxu0 }
 0x2fa   :  { %v1225_v7 = vmax.f32 %v1177_v21, 0.0 }
 0x2fb   :  { %v1179_v22 = vpop.f32.mrf.mxu0 }
 0x2fc   :  { %v1364_v10 = vpop.trf.xlu0 }
 0x2fd   :  { %v1180_v23 = vpop.f32.mrf.mxu0 }
 0x2fe   :  { %v1226_v48 = vmax.f32 %v1180_v23, 0.0 }
 0x2ff   :  { %v1182_v24 = vpop.f32.mrf.mxu0 }
 0x300   :  { %v1237_v12 = vpack.c.bf16 %v1226_v48, %v1225_v7  ;;  %v1365_v18 = vpop.trf.xlu0 }
 0x301   :  { %v1185_v25 = vpop.f32.mrf.mxu0 }
 0x302   :  { %v1227_v5 = vmax.f32 %v1185_v25, 0.0 }
 0x303   :  { %v1187_v26 = vpop.f32.mrf.mxu0 }
 0x304   :  { %v1366_v19 = vpop.trf.xlu0 }
 0x305   :  { %v1188_v27 = vpop.f32.mrf.mxu0 }
 0x306   :  { %v1228_v54 = vmax.f32 %v1188_v27, 0.0 }
 0x307   :  { %v1190_v28 = vpop.f32.mrf.mxu0 }
 0x308   :  { %v1238_v6 = vpack.c.bf16 %v1228_v54, %v1227_v5 }
 0x309   :  { %v1193_v29 = vpop.f32.mrf.mxu0 }
 0x30a   :  { %v1229_v2 = vmax.f32 %v1193_v29, 0.0 }
 0x30b   :  { %v1195_v31 = vpop.f32.mrf.mxu0 }
 0x30d   :  { %v1196_v32 = vpop.f32.mrf.mxu0 }
 0x30e   :  { %v1230_v57 = vmax.f32 %v1196_v32, 0.0 }
 0x30f   :  { %v1198_v33 = vpop.f32.mrf.mxu0 }
 0x310   :  { %v1239_v3 = vpack.c.bf16 %v1230_v57, %v1229_v2 }
 0x311   :  { %v1201_v34 = vpop.f32.mrf.mxu0 }
 0x312   :  { %v1231_v62 = vmax.f32 %v1201_v34, 0.0  ;;  %v4791_v34 = vld [vmem:[#allocation7 + $0xd4] ss:$8 sps:$4 sm:$0xff]  }
 0x313   :  { %v1203_v35 = vpop.f32.mrf.mxu0  ;;  %4019 = vmatprep.mubr.msk.bf16.mxu0 %vm530_vm1, %v4791_v34 }
 0x315   :  { %v1204_v36 = vpop.f32.mrf.mxu0 }
 0x316   :  { %v1232_v60 = vmax.f32 %v1204_v36, 0.0 }
 0x317   :  { %v1206_v38 = vpop.f32.mrf.mxu0 }
 0x318   :  { %v1240_v1 = vpack.c.bf16 %v1232_v60, %v1231_v62 }
 0x319   :  { %v1209_v39 = vpop.f32.mrf.mxu0 }
 0x31a   :  { %v1233_v58 = vmax.f32 %v1209_v39, 0.0 }
 0x31b   :  { %v1211_v40 = vpop.f32.mrf.mxu0 }
 0x31d   :  { %v1212_v41 = vpop.f32.mrf.mxu0 }
 0x31e   :  { %v1234_v49 = vmax.f32 %v1212_v41, 0.0 }
 0x31f   :  { %v1214_v42 = vpop.f32.mrf.mxu0 }
 0x320   :  { %v1241_v61 = vpack.c.bf16 %v1234_v49, %v1233_v58 }
 0x321   :  { %v1217_v43 = vpop.f32.mrf.mxu0 }
 0x322   :  { %v1235_v45 = vmax.f32 %v1217_v43, 0.0 }
 0x323   :  { %v1219_v46 = vpop.f32.mrf.mxu0 }
 0x324   :  { %v1242_v47 = vpack.c.bf16 %v1235_v45, %v1235_v45 }
 0x325   :  { %v1220_v50 = vpop.f32.mrf.mxu0 }
 0x326   :  { %v1251_v56 = vsel %vm1249_vm3, %v1242_v47, 0 }
 0x327   :  { %v1221_v59 = vpop.f32.mrf.mxu0  ;;  %4464 = vmatpush3.bf16.msra.mxu1 %v1251_v56  ;;  %v1972_v56 = vld [vmem:[#allocation5 + $0x38] sm:$0xff] }
 0x328   :  { %4465 = vmatprep.subr.bf16.mxu1 %v4990_v30  ;;  %2005 = vxpose.xlu1.b32.start.end [1/1] (short) (narrow) %v1972_v56, 80 }
 0x32b   :  { %4466 = vmatpush3.bf16.msra.mxu1 %v1241_v61 }
 0x32c   :  { %4467 = vmatprep.subr.bf16.mxu1 %v4990_v30 }
 0x32f   :  { %4468 = vmatpush3.bf16.msra.mxu1 %v1240_v1 }
 0x330   :  { %4469 = vmatprep.subr.bf16.mxu1 %v4990_v30 }
 0x333   :  { %4470 = vmatpush3.bf16.msra.mxu1 %v1239_v3 }
 0x334   :  { %4471 = vmatprep.subr.bf16.mxu1 %v4990_v30 }
 0x337   :  { %4472 = vmatpush3.bf16.msra.mxu1 %v1238_v6 }
 0x338   :  { %4473 = vmatprep.subr.bf16.mxu1 %v4990_v30 }
 0x33b   :  { %4474 = vmatpush3.bf16.msra.mxu1 %v1237_v12 }
 0x33c   :  { %4475 = vmatprep.subr.bf16.mxu1 %v4990_v30 }
 0x33f   :  { %4476 = vmatpush3.bf16.msra.mxu1 %v1236_v20  ;;  %v5222_v20 = vld [vmem:[#allocation2] sm:$0xff] }
 0x340   :  { %4481 = vmatprep.subr.bf16.mxu1 %v4990_v30 }
 0x342   :  { %4478 = vmatmul.mubr.msk.bf16.vlgmr.msra.gmra.mxu1 %vm1245_vm4, %v1244_v15 }
 0x343   :  { %4482 = vmatpush3.bf16.msra.mxu1 %v1297_v16  ;;  %4495 = vmatprep.mubr.msk.bf16.mxu1 %vm4991_vm2, %v4990_v30 }
 0x344   :  { %4483 = vmatprep.subr.bf16.mxu1 %v4990_v30 }
 0x347   :  { %4484 = vmatpush3.bf16.msra.mxu1 %v5191_v9  ;;  %v660_v9 = vld [vmem:[#allocation8] sm:$0xf] }
 0x348   :  { %4485 = vmatprep.subr.bf16.mxu1 %v4990_v30 }
 0x34b   :  { %4486 = vmatpush3.bf16.msra.mxu1 %v5189_v51  ;;  %v1367_v51 = vpop.trf.xlu0 }
 0x34c   :  { %4487 = vmatprep.subr.bf16.mxu1 %v4990_v30 }
 0x34f   :  { %4488 = vmatpush3.bf16.msra.mxu1 %v5187_v63  ;;  %v1390_v63 = vpop.trf.xlu1 }
 0x350   :  { %4489 = vmatprep.subr.bf16.mxu1 %v4990_v30 }
 0x353   :  { %4490 = vmatpush3.bf16.msra.mxu1 %v5185_v55  ;;  %v1391_v55 = vpop.trf.xlu1 }
 0x354   :  { %4491 = vmatprep.subr.bf16.mxu1 %v4990_v30 }
 0x357   :  { %4492 = vmatpush3.bf16.msra.mxu1 %v5181_v44  ;;  %v1368_v44 = vpop.trf.xlu0  ;;  %v1392_v21 = vpop.trf.xlu1 }
 0x358   :  { %4493 = vmatprep.subr.bf16.mxu1 %v4990_v30 }
 0x35b   :  { %4494 = vmatpush3.bf16.msra.mxu1 %v5179_v37  ;;  %v1369_v37 = vpop.trf.xlu0  ;;  %v1393_v23 = vpop.trf.xlu1 }
 0x35c   :  { %4499 = vmatprep.subr.mxu1 %v5222_v20 }
 0x35e   :  { %4496 = vmatmul.mubr.msk.bf16.vlgmr.msra.gmra.mxu1 %vm1245_vm4, %v660_v9 }
 0x35f   :  { %4501 = vmatprep.mubr.msk.f32.mxu1 %vm144_vm0, %v5195_v52  ;;  %4500 = vmatpush3.msra.mxu1 %v5222_v20  ;;  %v1370_v22 = vpop.trf.xlu0  ;;  %v1394_v25 = vpop.trf.xlu1  ;;  %v1971_v52 = vld [vmem:[#allocation5 + $0x30] sm:$0xff] }
 0x360   :  { %4540 = vmatprep.subr.bf16.mxu1 %v4990_v30  ;;  %1973 = vxpose.xlu0.b32.start.end [1/1] (short) %v1971_v52, 128 }
 0x363   :  { %v1371_v24 = vpop.trf.xlu0  ;;  %v1395_v27 = vpop.trf.xlu1 }
 0x366   :  { %4502 = vmatmul.mubr.msk.f32.vlgmr.msra.gmra.mxu1 %vm144_vm0, %v1359_v0 }
 0x367   :  { %4504 = vmatprep.mubr.msk.f32.mxu1 %vm144_vm0, %v1360_v4  ;;  %v1372_v26 = vpop.trf.xlu0  ;;  %v1396_v29 = vpop.trf.xlu1 }
 0x36a   :  { %4505 = vmatmul.mubr.msk.f32.gmra.mxu1 %vm144_vm0, %v1361_v8 }
 0x36b   :  { %4507 = vmatprep.mubr.msk.f32.mxu1 %vm144_vm0, %v1362_v14  ;;  %v1373_v28 = vpop.trf.xlu0  ;;  %v1397_v31 = vpop.trf.xlu1 }
 0x36e   :  { %4508 = vmatmul.mubr.msk.f32.gmra.mxu1 %vm144_vm0, %v1363_v17 }
 0x36f   :  { %4510 = vmatprep.mubr.msk.f32.mxu1 %vm144_vm0, %v1364_v10  ;;  %v1398_v32 = vpop.trf.xlu1 }
 0x372   :  { %4511 = vmatmul.mubr.msk.f32.gmra.mxu1 %vm144_vm0, %v1365_v18 }
 0x373   :  { %4513 = vmatprep.mubr.msk.f32.mxu1 %vm144_vm0, %v1366_v19  ;;  %v1399_v33 = vpop.trf.xlu1 }
 0x376   :  { %4514 = vmatmul.mubr.msk.f32.gmra.mxu1 %vm144_vm0, %v1367_v51 }
 0x377   :  { %4516 = vmatprep.mubr.msk.f32.mxu1 %vm144_vm0, %v1368_v44 }
 0x37a   :  { %4517 = vmatmul.mubr.msk.f32.gmra.mxu1 %vm144_vm0, %v1369_v37 }
 0x37b   :  { %4519 = vmatprep.mubr.msk.f32.mxu1 %vm144_vm0, %v1370_v22 }
 0x37e   :  { %4520 = vmatmul.mubr.msk.f32.gmra.mxu1 %vm144_vm0, %v1371_v24 }
 0x37f   :  { %4522 = vmatprep.mubr.msk.f32.mxu1 %vm144_vm0, %v1372_v26 }
 0x382   :  { %4523 = vmatmul.mubr.msk.f32.gmra.mxu1 %vm144_vm0, %v1373_v28 }
 0x383   :  { %4525 = vmatprep.mubr.msk.f32.mxu1 %vm144_vm0, %v1390_v63 }
 0x386   :  { %4526 = vmatmul.mubr.msk.f32.gmra.mxu1 %vm144_vm0, %v1391_v55 }
 0x387   :  { %4528 = vmatprep.mubr.msk.f32.mxu1 %vm144_vm0, %v1392_v21 }
 0x38a   :  { %4529 = vmatmul.mubr.msk.f32.gmra.mxu1 %vm144_vm0, %v1393_v23 }
 0x38b   :  { %4531 = vmatprep.mubr.msk.f32.mxu1 %vm144_vm0, %v1394_v25 }
 0x38e   :  { %4532 = vmatmul.mubr.msk.f32.gmra.mxu1 %vm144_vm0, %v1395_v27 }
 0x38f   :  { %4534 = vmatprep.mubr.msk.f32.mxu1 %vm144_vm0, %v1396_v29 }
 0x392   :  { %4535 = vmatmul.mubr.msk.f32.gmra.mxu1 %vm144_vm0, %v1397_v31 }
 0x393   :  { %4537 = vmatprep.mubr.msk.f32.mxu1 %vm144_vm0, %v1398_v32 }
 0x396   :  { %4538 = vmatmul.mubr.msk.f32.gmra.mxu1 %vm144_vm0, %v1399_v33 }
 0x397   :  { %4554 = vmatprep.mubr.msk.bf16.mxu1 %vm4991_vm2, %v4990_v30 }
 0x402   :  { %v1287_v35 = vpop.f32.mrf.mxu1 }
 0x404   :  { %v4479_v36 = vpop.f32.mrf.mxu1 }
 0x406   :  { %v1290_v38 = vpop.f32.mrf.mxu1 }
 0x408   :  { %v4480_v39 = vpop.f32.mrf.mxu1 }
 0x41e   :  { %v1333_v40 = vpop.f32.mrf.mxu1 }
 0x41f   :  { %v5258_v41 = vadd.f32 %v1333_v40, %v1287_v35 }
 0x420   :  { %v4497_v42 = vpop.f32.mrf.mxu1 }
 0x422   :  { %v1336_v43 = vpop.f32.mrf.mxu1 }
 0x424   :  { %v4498_v45 = vpop.f32.mrf.mxu1 }
 0x426   :  { %v5260_v46 = vpop.f32.mrf.mxu1 }
 0x427   :  { %v1680_v33 = vmax.f32 %v5260_v46, 0.0 }
 0x428   :  { %v5262_v47 = vpop.f32.mrf.mxu1 }
 0x429   :  { %v1679_v29 = vmax.f32 %v5262_v47, 0.0 }
 0x42a   :  { %v4506_v49 = vpop.f32.mrf.mxu1 }
 0x42b   :  { %v1682_v28 = vmax.f32 %v4506_v49, 0.0  ;;  %v1705_v34 = vpack.c.bf16 %v1680_v33, %v1679_v29 }
 0x42c   :  { %v1560_v50 = vpop.f32.mrf.mxu1 }
 0x42d   :  { %v1681_v25 = vmax.f32 %v1560_v50, 0.0 }
 0x42e   :  { %v4509_v58 = vpop.f32.mrf.mxu1 }
 0x42f   :  { %v1684_v23 = vmax.f32 %v4509_v58, 0.0  ;;  %v1706_v31 = vpack.c.bf16 %v1682_v28, %v1681_v25 }
 0x430   :  { %v1570_v59 = vpop.f32.mrf.mxu1 }
 0x431   :  { %v1683_v21 = vmax.f32 %v1570_v59, 0.0  ;;  %v4789_v59 = vld [vmem:[#allocation7 + $0xd0] ss:$8 sps:$4 sm:$0xff]  }
 0x432   :  { %v4512_v60 = vpop.f32.mrf.mxu1 }
 0x433   :  { %v1686_v55 = vmax.f32 %v4512_v60, 0.0  ;;  %v1707_v26 = vpack.c.bf16 %v1684_v23, %v1683_v21  ;;  %v4792_v60 = vld [vmem:[#allocation7 + $0xe4] ss:$8 sps:$4 sm:$0xff]  }
 0x434   :  { %v1580_v61 = vpop.f32.mrf.mxu1 }
 0x435   :  { %v1685_v51 = vmax.f32 %v1580_v61, 0.0  ;;  %v4794_v61 = vld [vmem:[#allocation7 + $0xe0] ss:$8 sps:$4 sm:$0xff]  }
 0x436   :  { %v4515_v62 = vpop.f32.mrf.mxu1 }
 0x437   :  { %v1688_v9 = vmax.f32 %v4515_v62, 0.0  ;;  %v1708_v22 = vpack.c.bf16 %v1686_v55, %v1685_v51  ;;  %v4795_v62 = vld [vmem:[#allocation7 + $0xf4] ss:$8 sps:$4 sm:$0xff]   ;;  %v1989_v55 = vpop.trf.xlu0 }
 0x438   :  { %v1590_v0 = vpop.f32.mrf.mxu1 }
 0x439   :  { %v1687_v10 = vmax.f32 %v1590_v0, 0.0  ;;  %v4797_v0 = vld [vmem:[#allocation7 + $0xf0] ss:$8 sps:$4 sm:$0xff]  }
 0x43a   :  { %v4518_v57 = vpop.f32.mrf.mxu1 }
 0x43b   :  { %v1690_v16 = vmax.f32 %v4518_v57, 0.0  ;;  %v1709_v63 = vpack.c.bf16 %v1688_v9, %v1687_v10  ;;  %v4798_v57 = vld [vmem:[#allocation7 + $0x104] ss:$8 sps:$4 sm:$0xff]   ;;  %v1990_v23 = vpop.trf.xlu0 }
 0x43c   :  { %v1600_v1 = vpop.f32.mrf.mxu1 }
 0x43d   :  { %v1689_v14 = vmax.f32 %v1600_v1, 0.0  ;;  %v4800_v1 = vld [vmem:[#allocation7 + $0x100] ss:$8 sps:$4 sm:$0xff]  }
 0x43e   :  { %v4521_v2 = vpop.f32.mrf.mxu1 }
 0x43f   :  { %v1692_v12 = vmax.f32 %v4521_v2, 0.0  ;;  %v1710_v18 = vpack.c.bf16 %v1690_v16, %v1689_v14  ;;  %v4801_v2 = vld [vmem:[#allocation7 + $0x114] ss:$8 sps:$4 sm:$0xff]  }
 0x440   :  { %v1610_v54 = vpop.f32.mrf.mxu1 }
 0x441   :  { %v1691_v7 = vmax.f32 %v1610_v54, 0.0  ;;  %v4803_v54 = vld [vmem:[#allocation7 + $0x110] ss:$8 sps:$4 sm:$0xff]  }
 0x442   :  { %v4524_v3 = vpop.f32.mrf.mxu1 }
 0x443   :  { %v1694_v5 = vmax.f32 %v4524_v3, 0.0  ;;  %v1711_v15 = vpack.c.bf16 %v1692_v12, %v1691_v7  ;;  %v4804_v3 = vld [vmem:[#allocation7 + $0x124] ss:$8 sps:$4 sm:$0xff]  }
 0x444   :  { %v1620_v4 = vpop.f32.mrf.mxu1 }
 0x445   :  { %v1693_v48 = vmax.f32 %v1620_v4, 0.0  ;;  %v1731_v4 = vld [vmem:[#allocation7 + $0x130] sm:$0xff] }
 0x446   :  { %v5264_v6 = vpop.f32.mrf.mxu1 }
 0x447   :  { %v1712_v8 = vpack.c.bf16 %v1694_v5, %v1693_v48  ;;  %v1696_v56 = vmax.f32 %v5264_v6, 0.0  ;;  %v4806_v5 = vld [vmem:[#allocation7 + $0x120] ss:$8 sps:$4 sm:$0xff]   ;;  %v4018_v48 = vcombine.high %v1731_v4, %v1731_v4  ;;  %v4017_v6 = vcombine.low %v1731_v4, %v1731_v4 }
 0x448   :  { %v5266_v11 = vpop.f32.mrf.mxu1 }
 0x449   :  { %1814 = vmatpush1.bf16.msra.mxu0 %v1712_v8  ;;  %v1695_v50 = vmax.f32 %v5266_v11, 0.0 }
 0x44a   :  { %v4530_v13 = vpop.f32.mrf.mxu1  ;;  %1815 = vmatprep.subr.bf16.mxu0 %v4989_v53 }
 0x44b   :  { %v1698_v49 = vmax.f32 %v4530_v13, 0.0  ;;  %v1713_v58 = vpack.c.bf16 %v1696_v56, %v1695_v50 }
 0x44c   :  { %v1640_v17 = vpop.f32.mrf.mxu1 }
 0x44d   :  { %1816 = vmatpush1.bf16.msra.mxu0 %v1711_v15  ;;  %v1697_v46 = vmax.f32 %v1640_v17, 0.0 }
 0x44e   :  { %1817 = vmatprep.subr.bf16.mxu0 %v4989_v53  ;;  %v4533_v19 = vpop.f32.mrf.mxu1 }
 0x44f   :  { %v1700_v42 = vmax.f32 %v4533_v19, 0.0  ;;  %v1714_v52 = vpack.c.bf16 %v1698_v49, %v1697_v46 }
 0x450   :  { %v1650_v44 = vpop.f32.mrf.mxu1 }
 0x451   :  { %1818 = vmatpush1.bf16.msra.mxu0 %v1710_v18  ;;  %v1699_v43 = vmax.f32 %v1650_v44, 0.0 }
 0x452   :  { %1819 = vmatprep.subr.bf16.mxu0 %v4989_v53  ;;  %v4536_v37 = vpop.f32.mrf.mxu1 }
 0x453   :  { %v1702_v38 = vmax.f32 %v4536_v37, 0.0  ;;  %v1715_v47 = vpack.c.bf16 %v1700_v42, %v1699_v43 }
 0x454   :  { %v1660_v24 = vpop.f32.mrf.mxu1 }
 0x455   :  { %1820 = vmatpush1.bf16.msra.mxu0 %v1709_v63  ;;  %v1701_v39 = vmax.f32 %v1660_v24, 0.0 }
 0x456   :  { %1821 = vmatprep.subr.bf16.mxu0 %v4989_v53  ;;  %v4539_v27 = vpop.f32.mrf.mxu1 }
 0x457   :  { %v1704_v35 = vmax.f32 %v4539_v27, 0.0  ;;  %v1716_v45 = vpack.c.bf16 %v1702_v38, %v1701_v39  ;;  %v1991_v27 = vpop.trf.xlu0 }
 0x458   :  { %v1670_v32 = vpop.f32.mrf.mxu1 }
 0x459   :  { %1822 = vmatpush1.bf16.msra.mxu0 %v1708_v22  ;;  %v1703_v36 = vmax.f32 %v1670_v32, 0.0 }
 0x45a   :  { %1823 = vmatprep.subr.bf16.mxu0 %v4989_v53 }
 0x45b   :  { %v1717_v40 = vpack.c.bf16 %v1704_v35, %v1703_v36  ;;  %v1992_v32 = vpop.trf.xlu0 }
 0x45d   :  { %1824 = vmatpush1.bf16.msra.mxu0 %v1707_v26 }
 0x45e   :  { %1825 = vmatprep.subr.bf16.mxu0 %v4989_v53 }
 0x45f   :  { %v1993_v36 = vpop.trf.xlu0 }
 0x461   :  { %1826 = vmatpush1.bf16.msra.mxu0 %v1706_v31 }
 0x462   :  { %1827 = vmatprep.subr.bf16.mxu0 %v4989_v53 }
 0x463   :  { %v1994_v49 = vpop.trf.xlu0 }
 0x465   :  { %1828 = vmatpush1.bf16.msra.mxu0 %v1705_v34 }
 0x466   :  { %1835 = vmatprep.subr.bf16.mxu0 %v4989_v53 }
 0x469   :  { %1836 = vmatpush2.bf16.msra.mxu0 %v1717_v40 }
 0x46a   :  { %1837 = vmatprep.subr.bf16.mxu0 %v4989_v53 }
 0x46d   :  { %1838 = vmatpush2.bf16.msra.mxu0 %v1716_v45 }
 0x46e   :  { %1839 = vmatprep.subr.bf16.mxu0 %v4989_v53 }
 0x471   :  { %1840 = vmatpush2.bf16.msra.mxu0 %v1715_v47 }
 0x472   :  { %1841 = vmatprep.subr.bf16.mxu0 %v4989_v53 }
 0x475   :  { %1842 = vmatpush2.bf16.msra.mxu0 %v1714_v52 }
 0x476   :  { %1843 = vmatprep.subr.bf16.mxu0 %v4989_v53 }
 0x479   :  { %1844 = vmatpush2.bf16.msra.mxu0 %v1713_v58 }
 0x47a   :  { %2444 = vmatprep.subr.bf16.mxu0 %v4989_v53 }
 0x47c   :  { %1846 = vmatmul.mubr.bf16.vlgmr.msra.gmra.mxu0 %v4789_v59 }
 0x47d   :  { %4020 = vmatprep.mubr.msk.bf16.mxu0 %vm530_vm1, %v4792_v60  ;;  %v1995_v60 = vpop.trf.xlu0 }
 0x484   :  { %1854 = vmatmul.mubr.bf16.gmra.mxu0 %v4794_v61 }
 0x485   :  { %4021 = vmatprep.mubr.msk.bf16.mxu0 %vm530_vm1, %v4795_v62 }
 0x48c   :  { %1862 = vmatmul.mubr.bf16.gmra.mxu0 %v4797_v0 }
 0x48d   :  { %4022 = vmatprep.mubr.msk.bf16.mxu0 %vm530_vm1, %v4798_v57 }
 0x494   :  { %1870 = vmatmul.mubr.bf16.gmra.mxu0 %v4800_v1  ;;  %v1996_v1 = vpop.trf.xlu0 }
 0x495   :  { %4023 = vmatprep.mubr.msk.bf16.mxu0 %vm530_vm1, %v4801_v2 }
 0x49c   :  { %1878 = vmatmul.mubr.bf16.gmra.mxu0 %v4803_v54 }
 0x49d   :  { %4024 = vmatprep.mubr.msk.bf16.mxu0 %vm530_vm1, %v4804_v3 }
 0x4a4   :  { %1886 = vmatmul.mubr.bf16.gmra.mxu0 %v4806_v5  ;;  %v1997_v5 = vpop.trf.xlu0 }
 0x4a5   :  { %4025 = vmatprep.mubr.msk.bf16.mxu0 %vm530_vm1, %v4018_v48  ;;  %v1922_v48 = vld [vmem:[#allocation8 + $0x8] sm:$0xf] }
 0x4ac   :  { %1894 = vmatmul.mubr.bf16.gmra.mxu0 %v4017_v6  ;;  %v1998_v6 = vpop.trf.xlu0 }
 0x53c   :  { %v1847_v7 = vpop.f32.mrf.mxu0 }
 0x53d   :  { %v1901_v12 = vmax.f32 %v1847_v7, 0.0  ;;  %v2021_v7 = vpop.trf.xlu1 }
 0x53e   :  { %v1849_v8 = vpop.f32.mrf.mxu0 }
 0x53f   :  { %v1999_v8 = vpop.trf.xlu0 }
 0x540   :  { %v1850_v11 = vpop.f32.mrf.mxu0 }
 0x541   :  { %v1902_v13 = vmax.f32 %v1850_v11, 0.0  ;;  %v2022_v11 = vpop.trf.xlu1 }
 0x542   :  { %v1852_v14 = vpop.f32.mrf.mxu0 }
 0x543   :  { %v5291_v15 = vpack.c.bf16 %v1902_v13, %v1901_v12  ;;  %v2000_v12 = vpop.trf.xlu0 }
 0x544   :  { %v1855_v16 = vpop.f32.mrf.mxu0 }
 0x545   :  { %v1903_v3 = vmax.f32 %v1855_v16, 0.0  ;;  %v2023_v13 = vpop.trf.xlu1 }
 0x546   :  { %v1857_v17 = vpop.f32.mrf.mxu0 }
 0x547   :  { %v2001_v14 = vpop.trf.xlu0 }
 0x548   :  { %v1858_v10 = vpop.f32.mrf.mxu0 }
 0x549   :  { %v1904_v2 = vmax.f32 %v1858_v10, 0.0 }
 0x54a   :  { %v1860_v18 = vpop.f32.mrf.mxu0 }
 0x54b   :  { %v1915_v4 = vpack.c.bf16 %v1904_v2, %v1903_v3  ;;  %v2002_v16 = vpop.trf.xlu0 }
 0x54c   :  { %v1863_v19 = vpop.f32.mrf.mxu0 }
 0x54d   :  { %v1905_v57 = vmax.f32 %v1863_v19, 0.0 }
 0x54e   :  { %v1865_v9 = vpop.f32.mrf.mxu0 }
 0x54f   :  { %v2003_v10 = vpop.trf.xlu0 }
 0x550   :  { %v1866_v51 = vpop.f32.mrf.mxu0 }
 0x551   :  { %v1906_v62 = vmax.f32 %v1866_v51, 0.0 }
 0x552   :  { %v1868_v63 = vpop.f32.mrf.mxu0 }
 0x553   :  { %v1916_v54 = vpack.c.bf16 %v1906_v62, %v1905_v57  ;;  %v2004_v19 = vpop.trf.xlu0 }
 0x554   :  { %v1871_v44 = vpop.f32.mrf.mxu0 }
 0x555   :  { %v1907_v61 = vmax.f32 %v1871_v44, 0.0 }
 0x556   :  { %v1873_v37 = vpop.f32.mrf.mxu0 }
 0x558   :  { %v1874_v21 = vpop.f32.mrf.mxu0 }
 0x559   :  { %v1908_v58 = vmax.f32 %v1874_v21, 0.0 }
 0x55a   :  { %v1876_v22 = vpop.f32.mrf.mxu0 }
 0x55b   :  { %v1917_v0 = vpack.c.bf16 %v1908_v58, %v1907_v61 }
 0x55c   :  { %v1879_v24 = vpop.f32.mrf.mxu0 }
 0x55d   :  { %v1909_v56 = vmax.f32 %v1879_v24, 0.0 }
 0x55e   :  { %v1881_v25 = vpop.f32.mrf.mxu0 }
 0x560   :  { %v1882_v26 = vpop.f32.mrf.mxu0 }
 0x561   :  { %v1910_v50 = vmax.f32 %v1882_v26, 0.0 }
 0x562   :  { %v1884_v28 = vpop.f32.mrf.mxu0 }
 0x563   :  { %v1918_v59 = vpack.c.bf16 %v1910_v50, %v1909_v56 }
 0x564   :  { %v1887_v29 = vpop.f32.mrf.mxu0 }
 0x565   :  { %v1911_v46 = vmax.f32 %v1887_v29, 0.0  ;;  %v2602_v29 = vld [vmem:[#allocation5 + $0x40] sm:$0xff] }
 0x566   :  { %v1889_v31 = vpop.f32.mrf.mxu0  ;;  %2604 = vxpose.xlu1.b32.start.end [1/1] (short) %v2602_v29, 128 }
 0x567   :  { %v2603_v31 = vld [vmem:[#allocation5 + $0x48] sm:$0xff] }
 0x568   :  { %v1890_v33 = vpop.f32.mrf.mxu0  ;;  %2636 = vxpose.xlu0.b32.start.end [1/1] (short) (narrow) %v2603_v31, 80 }
 0x569   :  { %v1912_v42 = vmax.f32 %v1890_v33, 0.0 }
 0x56a   :  { %v1892_v34 = vpop.f32.mrf.mxu0 }
 0x56b   :  { %v1919_v52 = vpack.c.bf16 %v1912_v42, %v1911_v46 }
 0x56c   :  { %v1895_v35 = vpop.f32.mrf.mxu0 }
 0x56d   :  { %v1913_v38 = vmax.f32 %v1895_v35, 0.0 }
 0x56e   :  { %v1897_v39 = vpop.f32.mrf.mxu0 }
 0x56f   :  { %v1920_v40 = vpack.c.bf16 %v1913_v38, %v1913_v38 }
 0x570   :  { %v1898_v43 = vpop.f32.mrf.mxu0 }
 0x571   :  { %v1927_v45 = vsel %vm1249_vm3, %v1920_v40, 0 }
 0x572   :  { %v1899_v47 = vpop.f32.mrf.mxu0  ;;  %4541 = vmatpush3.bf16.msra.mxu1 %v1927_v45 }
 0x573   :  { %4542 = vmatprep.subr.bf16.mxu1 %v4990_v30 }
 0x576   :  { %4543 = vmatpush3.bf16.msra.mxu1 %v1919_v52 }
 0x577   :  { %4544 = vmatprep.subr.bf16.mxu1 %v4990_v30 }
 0x57a   :  { %4545 = vmatpush3.bf16.msra.mxu1 %v1918_v59 }
 0x57b   :  { %4546 = vmatprep.subr.bf16.mxu1 %v4990_v30 }
 0x57e   :  { %4547 = vmatpush3.bf16.msra.mxu1 %v1917_v0 }
 0x57f   :  { %4548 = vmatprep.subr.bf16.mxu1 %v4990_v30 }
 0x582   :  { %4549 = vmatpush3.bf16.msra.mxu1 %v1916_v54 }
 0x583   :  { %4550 = vmatprep.subr.bf16.mxu1 %v4990_v30 }
 0x586   :  { %4551 = vmatpush3.bf16.msra.mxu1 %v1915_v4 }
 0x587   :  { %4552 = vmatprep.subr.bf16.mxu1 %v4990_v30 }
 0x58a   :  { %4553 = vmatpush3.bf16.msra.mxu1 %v5291_v15  ;;  %v2024_v15 = vpop.trf.xlu1 }
 0x58b   :  { %4558 = vmatprep.subr.mxu1 %v5222_v20 }
 0x58d   :  { %4555 = vmatmul.mubr.msk.bf16.vlgmr.msra.gmra.mxu1 %vm1245_vm4, %v1922_v48 }
 0x58e   :  { %4560 = vmatprep.mubr.msk.f32.mxu1 %vm144_vm0, %v1989_v55  ;;  %4559 = vmatpush3.msra.mxu1 %v5222_v20  ;;  %v2025_v17 = vpop.trf.xlu1  ;;  %v4811_v55 = vld [vmem:[#allocation7 + $0x13c] ss:$8 sps:$4 sm:$0xff]  }
 0x58f   :  { %4599 = vmatprep.subr.bf16.mxu1 %v4990_v30  ;;  %4067 = vmatprep.mubr.msk.bf16.mxu0 %vm530_vm1, %v4811_v55 }
 0x592   :  { %v2026_v18 = vpop.trf.xlu1 }
 0x595   :  { %4561 = vmatmul.mubr.msk.f32.vlgmr.msra.gmra.mxu1 %vm144_vm0, %v1990_v23 }
 0x596   :  { %4563 = vmatprep.mubr.msk.f32.mxu1 %vm144_vm0, %v1991_v27  ;;  %v2027_v9 = vpop.trf.xlu1 }
 0x599   :  { %4564 = vmatmul.mubr.msk.f32.gmra.mxu1 %vm144_vm0, %v1992_v32 }
 0x59a   :  { %4566 = vmatprep.mubr.msk.f32.mxu1 %vm144_vm0, %v1993_v36  ;;  %v2028_v51 = vpop.trf.xlu1 }
 0x59d   :  { %4567 = vmatmul.mubr.msk.f32.gmra.mxu1 %vm144_vm0, %v1994_v49 }
 0x59e   :  { %4569 = vmatprep.mubr.msk.f32.mxu1 %vm144_vm0, %v1995_v60  ;;  %v2029_v63 = vpop.trf.xlu1 }
 0x5a1   :  { %4570 = vmatmul.mubr.msk.f32.gmra.mxu1 %vm144_vm0, %v1996_v1 }
 0x5a2   :  { %4572 = vmatprep.mubr.msk.f32.mxu1 %vm144_vm0, %v1997_v5  ;;  %v2030_v44 = vpop.trf.xlu1 }
 0x5a5   :  { %4573 = vmatmul.mubr.msk.f32.gmra.mxu1 %vm144_vm0, %v1998_v6 }
 0x5a6   :  { %4575 = vmatprep.mubr.msk.f32.mxu1 %vm144_vm0, %v1999_v8 }
 0x5a9   :  { %4576 = vmatmul.mubr.msk.f32.gmra.mxu1 %vm144_vm0, %v2000_v12 }
 0x5aa   :  { %4578 = vmatprep.mubr.msk.f32.mxu1 %vm144_vm0, %v2001_v14 }
 0x5ad   :  { %4579 = vmatmul.mubr.msk.f32.gmra.mxu1 %vm144_vm0, %v2002_v16 }
 0x5ae   :  { %4581 = vmatprep.mubr.msk.f32.mxu1 %vm144_vm0, %v2003_v10 }
 0x5b1   :  { %4582 = vmatmul.mubr.msk.f32.gmra.mxu1 %vm144_vm0, %v2004_v19 }
 0x5b2   :  { %4584 = vmatprep.mubr.msk.f32.mxu1 %vm144_vm0, %v2021_v7 }
 0x5b5   :  { %4585 = vmatmul.mubr.msk.f32.gmra.mxu1 %vm144_vm0, %v2022_v11 }
 0x5b6   :  { %4587 = vmatprep.mubr.msk.f32.mxu1 %vm144_vm0, %v2023_v13 }
 0x5b9   :  { %4588 = vmatmul.mubr.msk.f32.gmra.mxu1 %vm144_vm0, %v2024_v15 }
 0x5ba   :  { %4590 = vmatprep.mubr.msk.f32.mxu1 %vm144_vm0, %v2025_v17 }
 0x5bd   :  { %4591 = vmatmul.mubr.msk.f32.gmra.mxu1 %vm144_vm0, %v2026_v18 }
 0x5be   :  { %4593 = vmatprep.mubr.msk.f32.mxu1 %vm144_vm0, %v2027_v9 }
 0x5c1   :  { %4594 = vmatmul.mubr.msk.f32.gmra.mxu1 %vm144_vm0, %v2028_v51 }
 0x5c2   :  { %4596 = vmatprep.mubr.msk.f32.mxu1 %vm144_vm0, %v2029_v63 }
 0x5c5   :  { %4597 = vmatmul.mubr.msk.f32.gmra.mxu1 %vm144_vm0, %v2030_v44 }
 0x5c6   :  { %4613 = vmatprep.mubr.msk.bf16.mxu1 %vm4991_vm2, %v4990_v30 }
 0x64d   :  { %v1963_v37 = vpop.f32.mrf.mxu1 }
 0x64e   :  { %v5335_v21 = vadd.f32 %v1963_v37, %v5258_v41 }
 0x64f   :  { %v4556_v22 = vpop.f32.mrf.mxu1 }
 0x651   :  { %v1966_v23 = vpop.f32.mrf.mxu1 }
 0x653   :  { %v4557_v24 = vpop.f32.mrf.mxu1 }
 0x655   :  { %v5337_v25 = vpop.f32.mrf.mxu1 }
 0x656   :  { %v2311_v19 = vmax.f32 %v5337_v25, 0.0 }
 0x657   :  { %v5339_v26 = vpop.f32.mrf.mxu1 }
 0x658   :  { %v2310_v17 = vmax.f32 %v5339_v26, 0.0 }
 0x659   :  { %v4565_v27 = vpop.f32.mrf.mxu1 }
 0x65a   :  { %v2313_v16 = vmax.f32 %v4565_v27, 0.0  ;;  %v2336_v9 = vpack.c.bf16 %v2311_v19, %v2310_v17 }
 0x65b   :  { %v2191_v28 = vpop.f32.mrf.mxu1 }
 0x65c   :  { %v2312_v13 = vmax.f32 %v2191_v28, 0.0 }
 0x65d   :  { %v4568_v32 = vpop.f32.mrf.mxu1 }
 0x65e   :  { %v2315_v11 = vmax.f32 %v4568_v32, 0.0  ;;  %v2337_v10 = vpack.c.bf16 %v2313_v16, %v2312_v13 }
 0x65f   :  { %v2201_v33 = vpop.f32.mrf.mxu1 }
 0x660   :  { %v2314_v7 = vmax.f32 %v2201_v33, 0.0  ;;  %v4809_v33 = vld [vmem:[#allocation7 + $0x138] ss:$8 sps:$4 sm:$0xff]  }
 0x661   :  { %v4571_v34 = vpop.f32.mrf.mxu1 }
 0x662   :  { %v2317_v48 = vmax.f32 %v4571_v34, 0.0  ;;  %v2338_v14 = vpack.c.bf16 %v2315_v11, %v2314_v7  ;;  %v4812_v34 = vld [vmem:[#allocation7 + $0x14c] ss:$8 sps:$4 sm:$0xff]  }
 0x663   :  { %v2211_v35 = vpop.f32.mrf.mxu1 }
 0x664   :  { %v2316_v3 = vmax.f32 %v2211_v35, 0.0  ;;  %v4814_v35 = vld [vmem:[#allocation7 + $0x148] ss:$8 sps:$4 sm:$0xff]  }
 0x665   :  { %v4574_v36 = vpop.f32.mrf.mxu1 }
 0x666   :  { %v2319_v54 = vmax.f32 %v4574_v36, 0.0  ;;  %v2339_v8 = vpack.c.bf16 %v2317_v48, %v2316_v3  ;;  %v4815_v36 = vld [vmem:[#allocation7 + $0x15c] ss:$8 sps:$4 sm:$0xff]   ;;  %v2620_v48 = vpop.trf.xlu1 }
 0x667   :  { %v2221_v41 = vpop.f32.mrf.mxu1 }
 0x668   :  { %v2318_v57 = vmax.f32 %v2221_v41, 0.0  ;;  %v4817_v41 = vld [vmem:[#allocation7 + $0x158] ss:$8 sps:$4 sm:$0xff]  }
 0x669   :  { %v4577_v38 = vpop.f32.mrf.mxu1 }
 0x66a   :  { %v2321_v62 = vmax.f32 %v4577_v38, 0.0  ;;  %v2340_v4 = vpack.c.bf16 %v2319_v54, %v2318_v57  ;;  %v4818_v38 = vld [vmem:[#allocation7 + $0x16c] ss:$8 sps:$4 sm:$0xff]   ;;  %v2621_v11 = vpop.trf.xlu1 }
 0x66b   :  { %v2231_v39 = vpop.f32.mrf.mxu1 }
 0x66c   :  { %v2320_v60 = vmax.f32 %v2231_v39, 0.0  ;;  %v4820_v39 = vld [vmem:[#allocation7 + $0x168] ss:$8 sps:$4 sm:$0xff]  }
 0x66d   :  { %v4580_v40 = vpop.f32.mrf.mxu1 }
 0x66e   :  { %v2323_v58 = vmax.f32 %v4580_v40, 0.0  ;;  %v2341_v1 = vpack.c.bf16 %v2321_v62, %v2320_v60  ;;  %v4821_v40 = vld [vmem:[#allocation7 + $0x17c] ss:$8 sps:$4 sm:$0xff]  }
 0x66f   :  { %v2241_v42 = vpop.f32.mrf.mxu1 }
 0x670   :  { %v2322_v50 = vmax.f32 %v2241_v42, 0.0  ;;  %v4823_v42 = vld [vmem:[#allocation7 + $0x178] ss:$8 sps:$4 sm:$0xff]  }
 0x671   :  { %v4583_v43 = vpop.f32.mrf.mxu1 }
 0x672   :  { %v2325_v46 = vmax.f32 %v4583_v43, 0.0  ;;  %v2342_v61 = vpack.c.bf16 %v2323_v58, %v2322_v50  ;;  %v4824_v43 = vld [vmem:[#allocation7 + $0x18c] ss:$8 sps:$4 sm:$0xff]  }
 0x673   :  { %v2251_v45 = vpop.f32.mrf.mxu1 }
 0x674   :  { %v2324_v47 = vmax.f32 %v2251_v45, 0.0  ;;  %v2362_v45 = vld [vmem:[#allocation7 + $0x198] sm:$0xff] }
 0x675   :  { %v5341_v49 = vpop.f32.mrf.mxu1 }
 0x676   :  { %v2343_v52 = vpack.c.bf16 %v2325_v46, %v2324_v47  ;;  %v2327_v31 = vmax.f32 %v5341_v49, 0.0  ;;  %v4826_v46 = vld [vmem:[#allocation7 + $0x188] ss:$8 sps:$4 sm:$0xff]   ;;  %v4066_v47 = vcombine.high %v2362_v45, %v2362_v45  ;;  %v4065_v49 = vcombine.low %v2362_v45, %v2362_v45 }
 0x677   :  { %v5343_v56 = vpop.f32.mrf.mxu1 }
 0x678   :  { %2445 = vmatpush1.bf16.msra.mxu0 %v2343_v52  ;;  %v2326_v28 = vmax.f32 %v5343_v56, 0.0 }
 0x679   :  { %v4589_v59 = vpop.f32.mrf.mxu1  ;;  %2446 = vmatprep.subr.bf16.mxu0 %v4989_v53 }
 0x67a   :  { %v2329_v27 = vmax.f32 %v4589_v59, 0.0  ;;  %v2344_v32 = vpack.c.bf16 %v2327_v31, %v2326_v28 }
 0x67b   :  { %v2271_v0 = vpop.f32.mrf.mxu1 }
 0x67c   :  { %2447 = vmatpush1.bf16.msra.mxu0 %v2342_v61  ;;  %v2328_v25 = vmax.f32 %v2271_v0, 0.0 }
 0x67d   :  { %2448 = vmatprep.subr.bf16.mxu0 %v4989_v53  ;;  %v4592_v2 = vpop.f32.mrf.mxu1 }
 0x67e   :  { %v2331_v22 = vmax.f32 %v4592_v2, 0.0  ;;  %v2345_v29 = vpack.c.bf16 %v2329_v27, %v2328_v25 }
 0x67f   :  { %v2281_v5 = vpop.f32.mrf.mxu1 }
 0x680   :  { %2449 = vmatpush1.bf16.msra.mxu0 %v2341_v1  ;;  %v2330_v23 = vmax.f32 %v2281_v5, 0.0 }
 0x681   :  { %2450 = vmatprep.subr.bf16.mxu0 %v4989_v53  ;;  %v4595_v6 = vpop.f32.mrf.mxu1 }
 0x682   :  { %v2333_v44 = vmax.f32 %v4595_v6, 0.0  ;;  %v2346_v26 = vpack.c.bf16 %v2331_v22, %v2330_v23 }
 0x683   :  { %v2291_v12 = vpop.f32.mrf.mxu1 }
 0x684   :  { %2451 = vmatpush1.bf16.msra.mxu0 %v2340_v4  ;;  %v2332_v55 = vmax.f32 %v2291_v12, 0.0 }
 0x685   :  { %2452 = vmatprep.subr.bf16.mxu0 %v4989_v53  ;;  %v4598_v15 = vpop.f32.mrf.mxu1 }
 0x686   :  { %v2335_v51 = vmax.f32 %v4598_v15, 0.0  ;;  %v2347_v24 = vpack.c.bf16 %v2333_v44, %v2332_v55  ;;  %v2622_v15 = vpop.trf.xlu1 }
 0x687   :  { %v2301_v18 = vpop.f32.mrf.mxu1 }
 0x688   :  { %2453 = vmatpush1.bf16.msra.mxu0 %v2339_v8  ;;  %v2334_v63 = vmax.f32 %v2301_v18, 0.0 }
 0x689   :  { %2454 = vmatprep.subr.bf16.mxu0 %v4989_v53 }
 0x68a   :  { %v2348_v37 = vpack.c.bf16 %v2335_v51, %v2334_v63  ;;  %v2623_v18 = vpop.trf.xlu1 }
 0x68c   :  { %2455 = vmatpush1.bf16.msra.mxu0 %v2338_v14 }
 0x68d   :  { %2456 = vmatprep.subr.bf16.mxu0 %v4989_v53 }
 0x68e   :  { %v2624_v63 = vpop.trf.xlu1 }
 0x690   :  { %2457 = vmatpush1.bf16.msra.mxu0 %v2337_v10 }
 0x691   :  { %2458 = vmatprep.subr.bf16.mxu0 %v4989_v53 }
 0x692   :  { %v2625_v27 = vpop.trf.xlu1 }
 0x694   :  { %2459 = vmatpush1.bf16.msra.mxu0 %v2336_v9 }
 0x695   :  { %2466 = vmatprep.subr.bf16.mxu0 %v4989_v53 }
 0x698   :  { %2467 = vmatpush2.bf16.msra.mxu0 %v2348_v37 }
 0x699   :  { %2468 = vmatprep.subr.bf16.mxu0 %v4989_v53 }
 0x69c   :  { %2469 = vmatpush2.bf16.msra.mxu0 %v2347_v24 }
 0x69d   :  { %2470 = vmatprep.subr.bf16.mxu0 %v4989_v53 }
 0x6a0   :  { %2471 = vmatpush2.bf16.msra.mxu0 %v2346_v26 }
 0x6a1   :  { %2472 = vmatprep.subr.bf16.mxu0 %v4989_v53 }
 0x6a4   :  { %2473 = vmatpush2.bf16.msra.mxu0 %v2345_v29 }
 0x6a5   :  { %2474 = vmatprep.subr.bf16.mxu0 %v4989_v53 }
 0x6a8   :  { %2475 = vmatpush2.bf16.msra.mxu0 %v2344_v32 }
 0x6a9   :  { %3075 = vmatprep.subr.bf16.mxu0 %v4989_v53 }
 0x6ab   :  { %2477 = vmatmul.mubr.bf16.vlgmr.msra.gmra.mxu0 %v4809_v33 }
 0x6ac   :  { %4068 = vmatprep.mubr.msk.bf16.mxu0 %vm530_vm1, %v4812_v34  ;;  %v2626_v34 = vpop.trf.xlu1 }
 0x6b3   :  { %2485 = vmatmul.mubr.bf16.gmra.mxu0 %v4814_v35 }
 0x6b4   :  { %4069 = vmatprep.mubr.msk.bf16.mxu0 %vm530_vm1, %v4815_v36 }
 0x6bb   :  { %2493 = vmatmul.mubr.bf16.gmra.mxu0 %v4817_v41 }
 0x6bc   :  { %4070 = vmatprep.mubr.msk.bf16.mxu0 %vm530_vm1, %v4818_v38 }
 0x6c3   :  { %2501 = vmatmul.mubr.bf16.gmra.mxu0 %v4820_v39  ;;  %v2627_v39 = vpop.trf.xlu1 }
 0x6c4   :  { %4071 = vmatprep.mubr.msk.bf16.mxu0 %vm530_vm1, %v4821_v40 }
 0x6cb   :  { %2509 = vmatmul.mubr.bf16.gmra.mxu0 %v4823_v42 }
 0x6cc   :  { %4072 = vmatprep.mubr.msk.bf16.mxu0 %vm530_vm1, %v4824_v43 }
 0x6d3   :  { %2517 = vmatmul.mubr.bf16.gmra.mxu0 %v4826_v46  ;;  %v2628_v46 = vpop.trf.xlu1 }
 0x6d4   :  { %4073 = vmatprep.mubr.msk.bf16.mxu0 %vm530_vm1, %v4066_v47  ;;  %v2553_v47 = vld [vmem:[#allocation8 + $0xc] sm:$0xf] }
 0x6db   :  { %2525 = vmatmul.mubr.bf16.gmra.mxu0 %v4065_v49  ;;  %v2629_v49 = vpop.trf.xlu1 }
 0x76b   :  { %v2478_v50 = vpop.f32.mrf.mxu0 }
 0x76c   :  { %v2532_v58 = vmax.f32 %v2478_v50, 0.0  ;;  %v2652_v50 = vpop.trf.xlu0 }
 0x76d   :  { %v2480_v52 = vpop.f32.mrf.mxu0 }
 0x76e   :  { %v2630_v52 = vpop.trf.xlu1 }
 0x76f   :  { %v2481_v56 = vpop.f32.mrf.mxu0 }
 0x770   :  { %v2533_v59 = vmax.f32 %v2481_v56, 0.0  ;;  %v2653_v56 = vpop.trf.xlu0 }
 0x771   :  { %v2483_v60 = vpop.f32.mrf.mxu0 }
 0x772   :  { %v5368_v61 = vpack.c.bf16 %v2533_v59, %v2532_v58  ;;  %v2631_v58 = vpop.trf.xlu1 }
 0x773   :  { %v2486_v62 = vpop.f32.mrf.mxu0 }
 0x774   :  { %v2534_v43 = vmax.f32 %v2486_v62, 0.0  ;;  %v2654_v59 = vpop.trf.xlu0 }
 0x775   :  { %v2488_v0 = vpop.f32.mrf.mxu0 }
 0x776   :  { %v2632_v60 = vpop.trf.xlu1 }
 0x777   :  { %v2489_v57 = vpop.f32.mrf.mxu0 }
 0x778   :  { %v2535_v40 = vmax.f32 %v2489_v57, 0.0 }
 0x779   :  { %v2491_v1 = vpop.f32.mrf.mxu0 }
 0x77a   :  { %v2546_v45 = vpack.c.bf16 %v2535_v40, %v2534_v43 }
 0x77b   :  { %v2494_v2 = vpop.f32.mrf.mxu0 }
 0x77c   :  { %v2536_v38 = vmax.f32 %v2494_v2, 0.0 }
 0x77d   :  { %v2496_v54 = vpop.f32.mrf.mxu0 }
 0x77f   :  { %v2497_v3 = vpop.f32.mrf.mxu0 }
 0x780   :  { %v2537_v36 = vmax.f32 %v2497_v3, 0.0 }
 0x781   :  { %v2499_v4 = vpop.f32.mrf.mxu0 }
 0x782   :  { %v2547_v42 = vpack.c.bf16 %v2537_v36, %v2536_v38 }
 0x783   :  { %v2502_v5 = vpop.f32.mrf.mxu0 }
 0x784   :  { %v2538_v35 = vmax.f32 %v2502_v5, 0.0  ;;  %v4831_v5 = vld [vmem:[#allocation7 + $0x1a4] ss:$8 sps:$4 sm:$0xff]  }
 0x785   :  { %v2504_v6 = vpop.f32.mrf.mxu0  ;;  %4115 = vmatprep.mubr.msk.bf16.mxu0 %vm530_vm1, %v4831_v5 }
 0x787   :  { %v2505_v7 = vpop.f32.mrf.mxu0 }
 0x788   :  { %v2539_v32 = vmax.f32 %v2505_v7, 0.0 }
 0x789   :  { %v2507_v8 = vpop.f32.mrf.mxu0 }
 0x78a   :  { %v2548_v41 = vpack.c.bf16 %v2539_v32, %v2538_v35 }
 0x78b   :  { %v2510_v12 = vpop.f32.mrf.mxu0 }
 0x78c   :  { %v2540_v31 = vmax.f32 %v2510_v12, 0.0 }
 0x78d   :  { %v2512_v13 = vpop.f32.mrf.mxu0 }
 0x78f   :  { %v2513_v14 = vpop.f32.mrf.mxu0 }
 0x790   :  { %v2541_v28 = vmax.f32 %v2513_v14, 0.0 }
 0x791   :  { %v2515_v16 = vpop.f32.mrf.mxu0 }
 0x792   :  { %v2549_v33 = vpack.c.bf16 %v2541_v28, %v2540_v31  ;;  %v3233_v16 = vld [vmem:[#allocation5 + $0x50] sm:$0xff] }
 0x793   :  { %v2518_v17 = vpop.f32.mrf.mxu0  ;;  %3235 = vxpose.xlu1.b32.start.end [1/1] (short) %v3233_v16, 128 }
 0x794   :  { %v2542_v25 = vmax.f32 %v2518_v17, 0.0  ;;  %v3234_v17 = vld [vmem:[#allocation5 + $0x58] sm:$0xff] }
 0x795   :  { %v2520_v10 = vpop.f32.mrf.mxu0  ;;  %3267 = vxpose.xlu0.b32.start.end [1/1] (short) (narrow) %v3234_v17, 80 }
 0x797   :  { %v2521_v19 = vpop.f32.mrf.mxu0 }
 0x798   :  { %v2543_v22 = vmax.f32 %v2521_v19, 0.0 }
 0x799   :  { %v2523_v9 = vpop.f32.mrf.mxu0 }
 0x79a   :  { %v2550_v29 = vpack.c.bf16 %v2543_v22, %v2542_v25 }
 0x79b   :  { %v2526_v51 = vpop.f32.mrf.mxu0 }
 0x79c   :  { %v2544_v44 = vmax.f32 %v2526_v51, 0.0 }
 0x79d   :  { %v2528_v55 = vpop.f32.mrf.mxu0 }
 0x79e   :  { %v2551_v37 = vpack.c.bf16 %v2544_v44, %v2544_v44 }
 0x79f   :  { %v2529_v23 = vpop.f32.mrf.mxu0 }
 0x7a0   :  { %v2558_v24 = vsel %vm1249_vm3, %v2551_v37, 0 }
 0x7a1   :  { %v2530_v26 = vpop.f32.mrf.mxu0  ;;  %4600 = vmatpush3.bf16.msra.mxu1 %v2558_v24 }
 0x7a2   :  { %4601 = vmatprep.subr.bf16.mxu1 %v4990_v30 }
 0x7a5   :  { %4602 = vmatpush3.bf16.msra.mxu1 %v2550_v29 }
 0x7a6   :  { %4603 = vmatprep.subr.bf16.mxu1 %v4990_v30 }
 0x7a9   :  { %4604 = vmatpush3.bf16.msra.mxu1 %v2549_v33 }
 0x7aa   :  { %4605 = vmatprep.subr.bf16.mxu1 %v4990_v30 }
 0x7ad   :  { %4606 = vmatpush3.bf16.msra.mxu1 %v2548_v41 }
 0x7ae   :  { %4607 = vmatprep.subr.bf16.mxu1 %v4990_v30 }
 0x7b1   :  { %4608 = vmatpush3.bf16.msra.mxu1 %v2547_v42 }
 0x7b2   :  { %4609 = vmatprep.subr.bf16.mxu1 %v4990_v30 }
 0x7b5   :  { %4610 = vmatpush3.bf16.msra.mxu1 %v2546_v45 }
 0x7b6   :  { %4611 = vmatprep.subr.bf16.mxu1 %v4990_v30 }
 0x7b9   :  { %4612 = vmatpush3.bf16.msra.mxu1 %v5368_v61  ;;  %v2633_v61 = vpop.trf.xlu1 }
 0x7ba   :  { %4617 = vmatprep.subr.mxu1 %v5222_v20 }
 0x7bc   :  { %4614 = vmatmul.mubr.msk.bf16.vlgmr.msra.gmra.mxu1 %vm1245_vm4, %v2553_v47 }
 0x7bd   :  { %4619 = vmatprep.mubr.msk.f32.mxu1 %vm144_vm0, %v2620_v48  ;;  %4618 = vmatpush3.msra.mxu1 %v5222_v20  ;;  %v2655_v20 = vpop.trf.xlu0  ;;  %v2634_v0 = vpop.trf.xlu1 }
 0x7be   :  { %4658 = vmatprep.subr.bf16.mxu1 %v4990_v30 }
 0x7c1   :  { %v2656_v62 = vpop.trf.xlu0  ;;  %v2635_v1 = vpop.trf.xlu1 }
 0x7c4   :  { %4620 = vmatmul.mubr.msk.f32.vlgmr.msra.gmra.mxu1 %vm144_vm0, %v2621_v11 }
 0x7c5   :  { %4622 = vmatprep.mubr.msk.f32.mxu1 %vm144_vm0, %v2622_v15  ;;  %v2657_v57 = vpop.trf.xlu0 }
 0x7c8   :  { %4623 = vmatmul.mubr.msk.f32.gmra.mxu1 %vm144_vm0, %v2623_v18 }
 0x7c9   :  { %4625 = vmatprep.mubr.msk.f32.mxu1 %vm144_vm0, %v2624_v63  ;;  %v2658_v2 = vpop.trf.xlu0 }
 0x7cc   :  { %4626 = vmatmul.mubr.msk.f32.gmra.mxu1 %vm144_vm0, %v2625_v27 }
 0x7cd   :  { %4628 = vmatprep.mubr.msk.f32.mxu1 %vm144_vm0, %v2626_v34  ;;  %v2659_v54 = vpop.trf.xlu0 }
 0x7d0   :  { %4629 = vmatmul.mubr.msk.f32.gmra.mxu1 %vm144_vm0, %v2627_v39 }
 0x7d1   :  { %4631 = vmatprep.mubr.msk.f32.mxu1 %vm144_vm0, %v2628_v46  ;;  %v2660_v3 = vpop.trf.xlu0 }
 0x7d4   :  { %4632 = vmatmul.mubr.msk.f32.gmra.mxu1 %vm144_vm0, %v2629_v49 }
 0x7d5   :  { %4634 = vmatprep.mubr.msk.f32.mxu1 %vm144_vm0, %v2630_v52  ;;  %v2661_v4 = vpop.trf.xlu0 }
 0x7d8   :  { %4635 = vmatmul.mubr.msk.f32.gmra.mxu1 %vm144_vm0, %v2631_v58 }
 0x7d9   :  { %4637 = vmatprep.mubr.msk.f32.mxu1 %vm144_vm0, %v2632_v60 }
 0x7dc   :  { %4638 = vmatmul.mubr.msk.f32.gmra.mxu1 %vm144_vm0, %v2633_v61 }
 0x7dd   :  { %4640 = vmatprep.mubr.msk.f32.mxu1 %vm144_vm0, %v2634_v0 }
 0x7e0   :  { %4641 = vmatmul.mubr.msk.f32.gmra.mxu1 %vm144_vm0, %v2635_v1 }
 0x7e1   :  { %4643 = vmatprep.mubr.msk.f32.mxu1 %vm144_vm0, %v2652_v50 }
 0x7e4   :  { %4644 = vmatmul.mubr.msk.f32.gmra.mxu1 %vm144_vm0, %v2653_v56 }
 0x7e5   :  { %4646 = vmatprep.mubr.msk.f32.mxu1 %vm144_vm0, %v2654_v59 }
 0x7e8   :  { %4647 = vmatmul.mubr.msk.f32.gmra.mxu1 %vm144_vm0, %v2655_v20 }
 0x7e9   :  { %4649 = vmatprep.mubr.msk.f32.mxu1 %vm144_vm0, %v2656_v62 }
 0x7ec   :  { %4650 = vmatmul.mubr.msk.f32.gmra.mxu1 %vm144_vm0, %v2657_v57 }
 0x7ed   :  { %4652 = vmatprep.mubr.msk.f32.mxu1 %vm144_vm0, %v2658_v2 }
 0x7f0   :  { %4653 = vmatmul.mubr.msk.f32.gmra.mxu1 %vm144_vm0, %v2659_v54 }
 0x7f1   :  { %4655 = vmatprep.mubr.msk.f32.mxu1 %vm144_vm0, %v2660_v3 }
 0x7f4   :  { %4656 = vmatmul.mubr.msk.f32.gmra.mxu1 %vm144_vm0, %v2661_v4 }
 0x7f5   :  { %4672 = vmatprep.mubr.msk.bf16.mxu1 %vm4991_vm2, %v4990_v30 }
 0x87c   :  { %v2594_v48 = vpop.f32.mrf.mxu1 }
 0x87d   :  { %v5412_v6 = vadd.f32 %v2594_v48, %v5335_v21 }
 0x87e   :  { %v4615_v7 = vpop.f32.mrf.mxu1 }
 0x880   :  { %v2597_v8 = vpop.f32.mrf.mxu1 }
 0x882   :  { %v4616_v11 = vpop.f32.mrf.mxu1 }
 0x884   :  { %v5414_v12 = vpop.f32.mrf.mxu1 }
 0x885   :  { %v2942_v57 = vmax.f32 %v5414_v12, 0.0 }
 0x886   :  { %v5416_v13 = vpop.f32.mrf.mxu1 }
 0x887   :  { %v2941_v61 = vmax.f32 %v5416_v13, 0.0 }
 0x888   :  { %v4624_v14 = vpop.f32.mrf.mxu1 }
 0x889   :  { %v2944_v20 = vmax.f32 %v4624_v14, 0.0  ;;  %v2967_v1 = vpack.c.bf16 %v2942_v57, %v2941_v61 }
 0x88a   :  { %v2822_v15 = vpop.f32.mrf.mxu1 }
 0x88b   :  { %v2943_v58 = vmax.f32 %v2822_v15, 0.0 }
 0x88c   :  { %v4627_v10 = vpop.f32.mrf.mxu1 }
 0x88d   :  { %v2946_v52 = vmax.f32 %v4627_v10, 0.0  ;;  %v2968_v62 = vpack.c.bf16 %v2944_v20, %v2943_v58  ;;  %v4829_v10 = vld [vmem:[#allocation7 + $0x1a0] ss:$8 sps:$4 sm:$0xff]  }
 0x88e   :  { %v2832_v18 = vpop.f32.mrf.mxu1 }
 0x88f   :  { %v2945_v49 = vmax.f32 %v2832_v18, 0.0  ;;  %v4832_v18 = vld [vmem:[#allocation7 + $0x1b4] ss:$8 sps:$4 sm:$0xff]  }
 0x890   :  { %v4630_v19 = vpop.f32.mrf.mxu1 }
 0x891   :  { %v2948_v46 = vmax.f32 %v4630_v19, 0.0  ;;  %v2969_v59 = vpack.c.bf16 %v2946_v52, %v2945_v49  ;;  %v4834_v19 = vld [vmem:[#allocation7 + $0x1b0] ss:$8 sps:$4 sm:$0xff]  }
 0x892   :  { %v2842_v9 = vpop.f32.mrf.mxu1 }
 0x893   :  { %v2947_v42 = vmax.f32 %v2842_v9, 0.0  ;;  %v4835_v9 = vld [vmem:[#allocation7 + $0x1c4] ss:$8 sps:$4 sm:$0xff]  }
 0x894   :  { %v4633_v51 = vpop.f32.mrf.mxu1 }
 0x895   :  { %v2950_v40 = vmax.f32 %v4633_v51, 0.0  ;;  %v2970_v50 = vpack.c.bf16 %v2948_v46, %v2947_v42  ;;  %v4837_v51 = vld [vmem:[#allocation7 + $0x1c0] ss:$8 sps:$4 sm:$0xff]  }
 0x896   :  { %v2852_v21 = vpop.f32.mrf.mxu1 }
 0x897   :  { %v2949_v41 = vmax.f32 %v2852_v21, 0.0  ;;  %v4838_v21 = vld [vmem:[#allocation7 + $0x1d4] ss:$8 sps:$4 sm:$0xff]  }
 0x898   :  { %v4636_v63 = vpop.f32.mrf.mxu1 }
 0x899   :  { %v2952_v35 = vmax.f32 %v4636_v63, 0.0  ;;  %v2971_v43 = vpack.c.bf16 %v2950_v40, %v2949_v41  ;;  %v4840_v63 = vld [vmem:[#allocation7 + $0x1d0] ss:$8 sps:$4 sm:$0xff]  }
 0x89a   :  { %v2862_v44 = vpop.f32.mrf.mxu1 }
 0x89b   :  { %v2951_v33 = vmax.f32 %v2862_v44, 0.0  ;;  %v4841_v44 = vld [vmem:[#allocation7 + $0x1e4] ss:$8 sps:$4 sm:$0xff]  }
 0x89c   :  { %v4639_v55 = vpop.f32.mrf.mxu1 }
 0x89d   :  { %v2954_v31 = vmax.f32 %v4639_v55, 0.0  ;;  %v2972_v38 = vpack.c.bf16 %v2952_v35, %v2951_v33  ;;  %v4843_v55 = vld [vmem:[#allocation7 + $0x1e0] ss:$8 sps:$4 sm:$0xff]  }
 0x89e   :  { %v2872_v37 = vpop.f32.mrf.mxu1 }
 0x89f   :  { %v2953_v27 = vmax.f32 %v2872_v37, 0.0  ;;  %v4844_v37 = vld [vmem:[#allocation7 + $0x1f4] ss:$8 sps:$4 sm:$0xff]  }
 0x8a0   :  { %v4642_v22 = vpop.f32.mrf.mxu1 }
 0x8a1   :  { %v2956_v24 = vmax.f32 %v4642_v22, 0.0  ;;  %v2973_v34 = vpack.c.bf16 %v2954_v31, %v2953_v27  ;;  %v2993_v22 = vld [vmem:[#allocation7 + $0x200] sm:$0xff] }
 0x8a2   :  { %v2882_v23 = vpop.f32.mrf.mxu1 }
 0x8a3   :  { %v2955_v25 = vmax.f32 %v2882_v23, 0.0  ;;  %v4846_v23 = vld [vmem:[#allocation7 + $0x1f0] ss:$8 sps:$4 sm:$0xff]  }
 0x8a4   :  { %v5418_v26 = vpop.f32.mrf.mxu1 }
 0x8a5   :  { %v2974_v28 = vpack.c.bf16 %v2956_v24, %v2955_v25  ;;  %v2958_v16 = vmax.f32 %v5418_v26, 0.0  ;;  %v4114_v24 = vcombine.high %v2993_v22, %v2993_v22  ;;  %v4113_v25 = vcombine.low %v2993_v22, %v2993_v22 }
 0x8a6   :  { %v5420_v29 = vpop.f32.mrf.mxu1 }
 0x8a7   :  { %3076 = vmatpush1.bf16.msra.mxu0 %v2974_v28  ;;  %v2957_v14 = vmax.f32 %v5420_v29, 0.0 }
 0x8a8   :  { %v4648_v32 = vpop.f32.mrf.mxu1  ;;  %3077 = vmatprep.subr.bf16.mxu0 %v4989_v53 }
 0x8a9   :  { %v2960_v13 = vmax.f32 %v4648_v32, 0.0  ;;  %v2975_v17 = vpack.c.bf16 %v2958_v16, %v2957_v14 }
 0x8aa   :  { %v2902_v36 = vpop.f32.mrf.mxu1 }
 0x8ab   :  { %3078 = vmatpush1.bf16.msra.mxu0 %v2973_v34  ;;  %v2959_v11 = vmax.f32 %v2902_v36, 0.0 }
 0x8ac   :  { %3079 = vmatprep.subr.bf16.mxu0 %v4989_v53  ;;  %v4651_v39 = vpop.f32.mrf.mxu1 }
 0x8ad   :  { %v2962_v48 = vmax.f32 %v4651_v39, 0.0  ;;  %v2976_v15 = vpack.c.bf16 %v2960_v13, %v2959_v11 }
 0x8ae   :  { %v2912_v45 = vpop.f32.mrf.mxu1 }
 0x8af   :  { %3080 = vmatpush1.bf16.msra.mxu0 %v2972_v38  ;;  %v2961_v7 = vmax.f32 %v2912_v45, 0.0  ;;  %v3251_v45 = vpop.trf.xlu1 }
 0x8b0   :  { %3081 = vmatprep.subr.bf16.mxu0 %v4989_v53  ;;  %v4654_v47 = vpop.f32.mrf.mxu1 }
 0x8b1   :  { %v2964_v3 = vmax.f32 %v4654_v47, 0.0  ;;  %v2977_v12 = vpack.c.bf16 %v2962_v48, %v2961_v7 }
 0x8b2   :  { %v2922_v56 = vpop.f32.mrf.mxu1 }
 0x8b3   :  { %3082 = vmatpush1.bf16.msra.mxu0 %v2971_v43  ;;  %v2963_v4 = vmax.f32 %v2922_v56, 0.0 }
 0x8b4   :  { %3083 = vmatprep.subr.bf16.mxu0 %v4989_v53  ;;  %v4657_v60 = vpop.f32.mrf.mxu1 }
 0x8b5   :  { %v2966_v2 = vmax.f32 %v4657_v60, 0.0  ;;  %v2978_v8 = vpack.c.bf16 %v2964_v3, %v2963_v4 }
 0x8b6   :  { %v2932_v0 = vpop.f32.mrf.mxu1 }
 0x8b7   :  { %3084 = vmatpush1.bf16.msra.mxu0 %v2970_v50  ;;  %v2965_v54 = vmax.f32 %v2932_v0, 0.0  ;;  %v3252_v50 = vpop.trf.xlu1 }
 0x8b8   :  { %3085 = vmatprep.subr.bf16.mxu0 %v4989_v53 }
 0x8b9   :  { %v2979_v5 = vpack.c.bf16 %v2966_v2, %v2965_v54 }
 0x8bb   :  { %3086 = vmatpush1.bf16.msra.mxu0 %v2969_v59  ;;  %v3253_v59 = vpop.trf.xlu1 }
 0x8bc   :  { %3087 = vmatprep.subr.bf16.mxu0 %v4989_v53 }
 0x8bf   :  { %3088 = vmatpush1.bf16.msra.mxu0 %v2968_v62  ;;  %v3254_v62 = vpop.trf.xlu1 }
 0x8c0   :  { %3089 = vmatprep.subr.bf16.mxu0 %v4989_v53 }
 0x8c3   :  { %3090 = vmatpush1.bf16.msra.mxu0 %v2967_v1  ;;  %v3255_v2 = vpop.trf.xlu1 }
 0x8c4   :  { %3097 = vmatprep.subr.bf16.mxu0 %v4989_v53 }
 0x8c7   :  { %3098 = vmatpush2.bf16.msra.mxu0 %v2979_v5 }
 0x8c8   :  { %3099 = vmatprep.subr.bf16.mxu0 %v4989_v53 }
 0x8cb   :  { %3100 = vmatpush2.bf16.msra.mxu0 %v2978_v8 }
 0x8cc   :  { %3101 = vmatprep.subr.bf16.mxu0 %v4989_v53 }
 0x8cf   :  { %3102 = vmatpush2.bf16.msra.mxu0 %v2977_v12  ;;  %v3256_v12 = vpop.trf.xlu1 }
 0x8d0   :  { %3103 = vmatprep.subr.bf16.mxu0 %v4989_v53 }
 0x8d3   :  { %3104 = vmatpush2.bf16.msra.mxu0 %v2976_v15 }
 0x8d4   :  { %3105 = vmatprep.subr.bf16.mxu0 %v4989_v53 }
 0x8d7   :  { %3106 = vmatpush2.bf16.msra.mxu0 %v2975_v17 }
 0x8d8   :  { %3706 = vmatprep.subr.bf16.mxu0 %v4989_v53 }
 0x8da   :  { %3108 = vmatmul.mubr.bf16.vlgmr.msra.gmra.mxu0 %v4829_v10  ;;  %v3257_v10 = vpop.trf.xlu1 }
 0x8db   :  { %4116 = vmatprep.mubr.msk.bf16.mxu0 %vm530_vm1, %v4832_v18 }
 0x8e2   :  { %3116 = vmatmul.mubr.bf16.gmra.mxu0 %v4834_v19 }
 0x8e3   :  { %4117 = vmatprep.mubr.msk.bf16.mxu0 %vm530_vm1, %v4835_v9 }
 0x8ea   :  { %3124 = vmatmul.mubr.bf16.gmra.mxu0 %v4837_v51 }
 0x8eb   :  { %4118 = vmatprep.mubr.msk.bf16.mxu0 %vm530_vm1, %v4838_v21  ;;  %v3258_v21 = vpop.trf.xlu1 }
 0x8ef   :  { %v3259_v22 = vpop.trf.xlu1 }
 0x8f2   :  { %3132 = vmatmul.mubr.bf16.gmra.mxu0 %v4840_v63 }
 0x8f3   :  { %4119 = vmatprep.mubr.msk.bf16.mxu0 %vm530_vm1, %v4841_v44 }
 0x8fa   :  { %3140 = vmatmul.mubr.bf16.gmra.mxu0 %v4843_v55 }
 0x8fb   :  { %4120 = vmatprep.mubr.msk.bf16.mxu0 %vm530_vm1, %v4844_v37 }
 0x902   :  { %3148 = vmatmul.mubr.bf16.gmra.mxu0 %v4846_v23  ;;  %v3184_v23 = vld [vmem:[#allocation8 + $0x10] sm:$0xf] }
 0x903   :  { %4121 = vmatprep.mubr.msk.bf16.mxu0 %vm530_vm1, %v4114_v24  ;;  %v3260_v24 = vpop.trf.xlu1 }
 0x90a   :  { %3156 = vmatmul.mubr.bf16.gmra.mxu0 %v4113_v25  ;;  %v4870_v25 = vld [vmem:[#allocation2] sm:$0xff] }
 0x99a   :  { %v3109_v26 = vpop.f32.mrf.mxu0 }
 0x99b   :  { %v3163_v29 = vmax.f32 %v3109_v26, 0.0  ;;  %v3283_v26 = vpop.trf.xlu0 }
 0x99c   :  { %v3111_v27 = vpop.f32.mrf.mxu0 }
 0x99d   :  { %v3261_v27 = vpop.trf.xlu1 }
 0x99e   :  { %v3112_v28 = vpop.f32.mrf.mxu0 }
 0x99f   :  { %v3164_v31 = vmax.f32 %v3112_v28, 0.0  ;;  %v3284_v28 = vpop.trf.xlu0 }
 0x9a0   :  { %v3114_v32 = vpop.f32.mrf.mxu0 }
 0x9a1   :  { %v5445_v33 = vpack.c.bf16 %v3164_v31, %v3163_v29  ;;  %v3262_v29 = vpop.trf.xlu1 }
 0x9a2   :  { %v3117_v34 = vpop.f32.mrf.mxu0 }
 0x9a3   :  { %v3165_v55 = vmax.f32 %v3117_v34, 0.0  ;;  %v3285_v31 = vpop.trf.xlu0 }
 0x9a4   :  { %v3119_v35 = vpop.f32.mrf.mxu0 }
 0x9a5   :  { %v3263_v32 = vpop.trf.xlu1 }
 0x9a6   :  { %v3120_v36 = vpop.f32.mrf.mxu0 }
 0x9a7   :  { %v3166_v63 = vmax.f32 %v3120_v36, 0.0 }
 0x9a8   :  { %v3122_v41 = vpop.f32.mrf.mxu0 }
 0x9a9   :  { %v3177_v37 = vpack.c.bf16 %v3166_v63, %v3165_v55  ;;  %v3264_v34 = vpop.trf.xlu1 }
 0x9aa   :  { %v3125_v38 = vpop.f32.mrf.mxu0 }
 0x9ab   :  { %v3167_v51 = vmax.f32 %v3125_v38, 0.0 }
 0x9ac   :  { %v3127_v39 = vpop.f32.mrf.mxu0 }
 0x9ad   :  { %v3265_v36 = vpop.trf.xlu1 }
 0x9ae   :  { %v3128_v40 = vpop.f32.mrf.mxu0 }
 0x9af   :  { %v3168_v19 = vmax.f32 %v3128_v40, 0.0 }
 0x9b0   :  { %v3130_v42 = vpop.f32.mrf.mxu0 }
 0x9b1   :  { %v3178_v44 = vpack.c.bf16 %v3168_v19, %v3167_v51  ;;  %v3266_v38 = vpop.trf.xlu1 }
 0x9b2   :  { %v3133_v43 = vpop.f32.mrf.mxu0 }
 0x9b3   :  { %v3169_v18 = vmax.f32 %v3133_v43, 0.0 }
 0x9b4   :  { %v3135_v46 = vpop.f32.mrf.mxu0 }
 0x9b6   :  { %v3136_v47 = vpop.f32.mrf.mxu0 }
 0x9b7   :  { %v3170_v16 = vmax.f32 %v3136_v47, 0.0 }
 0x9b8   :  { %v3138_v49 = vpop.f32.mrf.mxu0 }
 0x9b9   :  { %v3179_v9 = vpack.c.bf16 %v3170_v16, %v3169_v18 }
 0x9ba   :  { %v3141_v52 = vpop.f32.mrf.mxu0 }
 0x9bb   :  { %v3171_v15 = vmax.f32 %v3141_v52, 0.0 }
 0x9bc   :  { %v3143_v56 = vpop.f32.mrf.mxu0 }
 0x9be   :  { %v3144_v58 = vpop.f32.mrf.mxu0 }
 0x9bf   :  { %v3172_v13 = vmax.f32 %v3144_v58, 0.0 }
 0x9c0   :  { %v3146_v60 = vpop.f32.mrf.mxu0 }
 0x9c1   :  { %v3180_v17 = vpack.c.bf16 %v3172_v13, %v3171_v15 }
 0x9c2   :  { %v3149_v20 = vpop.f32.mrf.mxu0 }
 0x9c3   :  { %v3173_v8 = vmax.f32 %v3149_v20, 0.0 }
 0x9c4   :  { %v3151_v61 = vpop.f32.mrf.mxu0 }
 0x9c6   :  { %v3152_v0 = vpop.f32.mrf.mxu0 }
 0x9c7   :  { %v3174_v5 = vmax.f32 %v3152_v0, 0.0 }
 0x9c8   :  { %v3154_v57 = vpop.f32.mrf.mxu0 }
 0x9c9   :  { %v3181_v14 = vpack.c.bf16 %v3174_v5, %v3173_v8 }
 0x9ca   :  { %v3157_v1 = vpop.f32.mrf.mxu0 }
 0x9cb   :  { %v3175_v54 = vmax.f32 %v3157_v1, 0.0 }
 0x9cc   :  { %v3159_v3 = vpop.f32.mrf.mxu0 }
 0x9cd   :  { %v3182_v4 = vpack.c.bf16 %v3175_v54, %v3175_v54 }
 0x9ce   :  { %v3160_v48 = vpop.f32.mrf.mxu0 }
 0x9cf   :  { %v3189_v7 = vsel %vm1249_vm3, %v3182_v4, 0 }
 0x9d0   :  { %v3161_v11 = vpop.f32.mrf.mxu0  ;;  %4659 = vmatpush3.bf16.msra.mxu1 %v3189_v7 }
 0x9d1   :  { %4660 = vmatprep.subr.bf16.mxu1 %v4990_v30 }
 0x9d4   :  { %4661 = vmatpush3.bf16.msra.mxu1 %v3181_v14 }
 0x9d5   :  { %4662 = vmatprep.subr.bf16.mxu1 %v4990_v30 }
 0x9d8   :  { %4663 = vmatpush3.bf16.msra.mxu1 %v3180_v17 }
 0x9d9   :  { %4664 = vmatprep.subr.bf16.mxu1 %v4990_v30 }
 0x9dc   :  { %4665 = vmatpush3.bf16.msra.mxu1 %v3179_v9 }
 0x9dd   :  { %4666 = vmatprep.subr.bf16.mxu1 %v4990_v30 }
 0x9e0   :  { %4667 = vmatpush3.bf16.msra.mxu1 %v3178_v44 }
 0x9e1   :  { %4668 = vmatprep.subr.bf16.mxu1 %v4990_v30 }
 0x9e4   :  { %4669 = vmatpush3.bf16.msra.mxu1 %v3177_v37 }
 0x9e5   :  { %4670 = vmatprep.subr.bf16.mxu1 %v4990_v30 }
 0x9e8   :  { %4671 = vmatpush3.bf16.msra.mxu1 %v5445_v33  ;;  %v3286_v33 = vpop.trf.xlu0 }
 0x9e9   :  { %4676 = vmatprep.subr.mxu1 %v4870_v25 }
 0x9eb   :  { %4673 = vmatmul.mubr.msk.bf16.vlgmr.msra.gmra.mxu1 %vm1245_vm4, %v3184_v23 }
 0x9ec   :  { %4678 = vmatprep.mubr.msk.f32.mxu1 %vm144_vm0, %v3251_v45  ;;  %4677 = vmatpush3.msra.mxu1 %v4870_v25  ;;  %v3287_v35 = vpop.trf.xlu0  ;;  %v4851_v45 = vld [vmem:[#allocation7 + $0x20c] ss:$8 sps:$4 sm:$0xff]  }
 0x9ed   :  { %4717 = vmatprep.subr.bf16.mxu1 %v4990_v30  ;;  %4163 = vmatprep.mubr.msk.bf16.mxu0 %vm530_vm1, %v4851_v45 }
 0x9f0   :  { %v3288_v41 = vpop.trf.xlu0 }
 0x9f3   :  { %4679 = vmatmul.mubr.msk.f32.vlgmr.msra.gmra.mxu1 %vm144_vm0, %v3252_v50 }
 0x9f4   :  { %4681 = vmatprep.mubr.msk.f32.mxu1 %vm144_vm0, %v3253_v59  ;;  %v3289_v39 = vpop.trf.xlu0 }
 0x9f7   :  { %4682 = vmatmul.mubr.msk.f32.gmra.mxu1 %vm144_vm0, %v3254_v62 }
 0x9f8   :  { %4684 = vmatprep.mubr.msk.f32.mxu1 %vm144_vm0, %v3255_v2  ;;  %v3290_v40 = vpop.trf.xlu0 }
 0x9fb   :  { %4685 = vmatmul.mubr.msk.f32.gmra.mxu1 %vm144_vm0, %v3256_v12 }
 0x9fc   :  { %4687 = vmatprep.mubr.msk.f32.mxu1 %vm144_vm0, %v3257_v10  ;;  %v3291_v42 = vpop.trf.xlu0 }
 0x9ff   :  { %4688 = vmatmul.mubr.msk.f32.gmra.mxu1 %vm144_vm0, %v3258_v21 }
 0xa00   :  { %4690 = vmatprep.mubr.msk.f32.mxu1 %vm144_vm0, %v3259_v22  ;;  %v3292_v43 = vpop.trf.xlu0 }
 0xa03   :  { %4691 = vmatmul.mubr.msk.f32.gmra.mxu1 %vm144_vm0, %v3260_v24 }
 0xa04   :  { %4693 = vmatprep.mubr.msk.f32.mxu1 %vm144_vm0, %v3261_v27 }
 0xa07   :  { %4694 = vmatmul.mubr.msk.f32.gmra.mxu1 %vm144_vm0, %v3262_v29 }
 0xa08   :  { %4696 = vmatprep.mubr.msk.f32.mxu1 %vm144_vm0, %v3263_v32 }
 0xa0b   :  { %4697 = vmatmul.mubr.msk.f32.gmra.mxu1 %vm144_vm0, %v3264_v34 }
 0xa0c   :  { %4699 = vmatprep.mubr.msk.f32.mxu1 %vm144_vm0, %v3265_v36 }
 0xa0f   :  { %4700 = vmatmul.mubr.msk.f32.gmra.mxu1 %vm144_vm0, %v3266_v38 }
 0xa10   :  { %4702 = vmatprep.mubr.msk.f32.mxu1 %vm144_vm0, %v3283_v26 }
 0xa13   :  { %4703 = vmatmul.mubr.msk.f32.gmra.mxu1 %vm144_vm0, %v3284_v28 }
 0xa14   :  { %4705 = vmatprep.mubr.msk.f32.mxu1 %vm144_vm0, %v3285_v31 }
 0xa17   :  { %4706 = vmatmul.mubr.msk.f32.gmra.mxu1 %vm144_vm0, %v3286_v33 }
 0xa18   :  { %4708 = vmatprep.mubr.msk.f32.mxu1 %vm144_vm0, %v3287_v35 }
 0xa1b   :  { %4709 = vmatmul.mubr.msk.f32.gmra.mxu1 %vm144_vm0, %v3288_v41 }
 0xa1c   :  { %4711 = vmatprep.mubr.msk.f32.mxu1 %vm144_vm0, %v3289_v39 }
 0xa1f   :  { %4712 = vmatmul.mubr.msk.f32.gmra.mxu1 %vm144_vm0, %v3290_v40 }
 0xa20   :  { %4714 = vmatprep.mubr.msk.f32.mxu1 %vm144_vm0, %v3291_v42 }
 0xa23   :  { %4715 = vmatmul.mubr.msk.f32.gmra.mxu1 %vm144_vm0, %v3292_v43 }
 0xa24   :  { %4731 = vmatprep.mubr.msk.bf16.mxu1 %vm4991_vm2, %v4990_v30 }
 0xaab   :  { %v3225_v46 = vpop.f32.mrf.mxu1 }
 0xaac   :  { %v5487_v47 = vadd.f32 %v3225_v46, %v5412_v6 }
 0xaad   :  { %v4674_v49 = vpop.f32.mrf.mxu1 }
 0xaaf   :  { %v3228_v50 = vpop.f32.mrf.mxu1 }
 0xab1   :  { %v4675_v52 = vpop.f32.mrf.mxu1 }
 0xab3   :  { %v5489_v56 = vpop.f32.mrf.mxu1 }
 0xab4   :  { %v3573_v35 = vmax.f32 %v5489_v56, 0.0 }
 0xab5   :  { %v5491_v58 = vpop.f32.mrf.mxu1 }
 0xab6   :  { %v3572_v32 = vmax.f32 %v5491_v58, 0.0 }
 0xab7   :  { %v4683_v59 = vpop.f32.mrf.mxu1 }
 0xab8   :  { %v3575_v31 = vmax.f32 %v4683_v59, 0.0  ;;  %v3598_v36 = vpack.c.bf16 %v3573_v35, %v3572_v32 }
 0xab9   :  { %v3453_v60 = vpop.f32.mrf.mxu1 }
 0xaba   :  { %v3574_v27 = vmax.f32 %v3453_v60, 0.0 }
 0xabb   :  { %v4686_v20 = vpop.f32.mrf.mxu1 }
 0xabc   :  { %v3577_v25 = vmax.f32 %v4686_v20, 0.0  ;;  %v3599_v33 = vpack.c.bf16 %v3575_v31, %v3574_v27  ;;  %v4849_v20 = vld [vmem:[#allocation7 + $0x208] ss:$8 sps:$4 sm:$0xff]  }
 0xabd   :  { %v3463_v61 = vpop.f32.mrf.mxu1 }
 0xabe   :  { %v3576_v23 = vmax.f32 %v3463_v61, 0.0  ;;  %v4852_v61 = vld [vmem:[#allocation7 + $0x21c] ss:$8 sps:$4 sm:$0xff]  }
 0xabf   :  { %v4689_v62 = vpop.f32.mrf.mxu1 }
 0xac0   :  { %v3579_v37 = vmax.f32 %v4689_v62, 0.0  ;;  %v3600_v28 = vpack.c.bf16 %v3577_v25, %v3576_v23  ;;  %v4854_v62 = vld [vmem:[#allocation7 + $0x218] ss:$8 sps:$4 sm:$0xff]  }
 0xac1   :  { %v3473_v0 = vpop.f32.mrf.mxu1 }
 0xac2   :  { %v3578_v63 = vmax.f32 %v3473_v0, 0.0  ;;  %v4855_v0 = vld [vmem:[#allocation7 + $0x22c] ss:$8 sps:$4 sm:$0xff]  }
 0xac3   :  { %v4692_v57 = vpop.f32.mrf.mxu1 }
 0xac4   :  { %v3581_v21 = vmax.f32 %v4692_v57, 0.0  ;;  %v3601_v24 = vpack.c.bf16 %v3579_v37, %v3578_v63  ;;  %v4857_v57 = vld [vmem:[#allocation7 + $0x228] ss:$8 sps:$4 sm:$0xff]  }
 0xac5   :  { %v3483_v1 = vpop.f32.mrf.mxu1 }
 0xac6   :  { %v3580_v19 = vmax.f32 %v3483_v1, 0.0  ;;  %v4858_v1 = vld [vmem:[#allocation7 + $0x23c] ss:$8 sps:$4 sm:$0xff]  }
 0xac7   :  { %v4695_v2 = vpop.f32.mrf.mxu1 }
 0xac8   :  { %v3583_v10 = vmax.f32 %v4695_v2, 0.0  ;;  %v3602_v44 = vpack.c.bf16 %v3581_v21, %v3580_v19  ;;  %v4860_v2 = vld [vmem:[#allocation7 + $0x238] ss:$8 sps:$4 sm:$0xff]  }
 0xac9   :  { %v3493_v54 = vpop.f32.mrf.mxu1 }
 0xaca   :  { %v3582_v16 = vmax.f32 %v3493_v54, 0.0  ;;  %v4861_v54 = vld [vmem:[#allocation7 + $0x24c] ss:$8 sps:$4 sm:$0xff]  }
 0xacb   :  { %v4698_v3 = vpop.f32.mrf.mxu1 }
 0xacc   :  { %v3585_v14 = vmax.f32 %v4698_v3, 0.0  ;;  %v3603_v9 = vpack.c.bf16 %v3583_v10, %v3582_v16  ;;  %v4864_v3 = vld [vmem:[#allocation7 + $0x25c] ss:$8 sps:$4 sm:$0xff]  }
 0xacd   :  { %v3503_v6 = vpop.f32.mrf.mxu1 }
 0xace   :  { %v3584_v11 = vmax.f32 %v3503_v6, 0.0  ;;  %v3624_v6 = vld [vmem:[#allocation7 + $0x268] sm:$0xff] }
 0xacf   :  { %v4701_v4 = vpop.f32.mrf.mxu1 }
 0xad0   :  { %v3587_v48 = vmax.f32 %v4701_v4, 0.0  ;;  %v3604_v17 = vpack.c.bf16 %v3585_v14, %v3584_v11  ;;  %v4866_v4 = vld [vmem:[#allocation7 + $0x258] ss:$8 sps:$4 sm:$0xff]  }
 0xad1   :  { %v3513_v5 = vpop.f32.mrf.mxu1 }
 0xad2   :  { %v3586_v7 = vmax.f32 %v3513_v5, 0.0  ;;  %v4162_v5 = vcombine.high %v3624_v6, %v3624_v6 }
 0xad3   :  { %v5493_v8 = vpop.f32.mrf.mxu1 }
 0xad4   :  { %v3605_v12 = vpack.c.bf16 %v3587_v48, %v3586_v7  ;;  %v3589_v59 = vmax.f32 %v5493_v8, 0.0  ;;  %v4161_v48 = vcombine.low %v3624_v6, %v3624_v6 }
 0xad5   :  { %v5495_v13 = vpop.f32.mrf.mxu1 }
 0xad6   :  { %3707 = vmatpush1.bf16.msra.mxu0 %v3605_v12  ;;  %v3588_v56 = vmax.f32 %v5495_v13, 0.0 }
 0xad7   :  { %v4707_v15 = vpop.f32.mrf.mxu1  ;;  %3708 = vmatprep.subr.bf16.mxu0 %v4989_v53 }
 0xad8   :  { %v3591_v52 = vmax.f32 %v4707_v15, 0.0  ;;  %v3606_v60 = vpack.c.bf16 %v3589_v59, %v3588_v56 }
 0xad9   :  { %v3533_v18 = vpop.f32.mrf.mxu1 }
 0xada   :  { %3709 = vmatpush1.bf16.msra.mxu0 %v3604_v17  ;;  %v3590_v49 = vmax.f32 %v3533_v18, 0.0 }
 0xadb   :  { %3710 = vmatprep.subr.bf16.mxu0 %v4989_v53  ;;  %v4710_v51 = vpop.f32.mrf.mxu1 }
 0xadc   :  { %v3593_v43 = vmax.f32 %v4710_v51, 0.0  ;;  %v3607_v58 = vpack.c.bf16 %v3591_v52, %v3590_v49 }
 0xadd   :  { %v3543_v55 = vpop.f32.mrf.mxu1 }
 0xade   :  { %3711 = vmatpush1.bf16.msra.mxu0 %v3603_v9  ;;  %v3592_v45 = vmax.f32 %v3543_v55, 0.0 }
 0xadf   :  { %3712 = vmatprep.subr.bf16.mxu0 %v4989_v53  ;;  %v4713_v22 = vpop.f32.mrf.mxu1 }
 0xae0   :  { %v3595_v39 = vmax.f32 %v4713_v22, 0.0  ;;  %v3608_v50 = vpack.c.bf16 %v3593_v43, %v3592_v45 }
 0xae1   :  { %v3553_v26 = vpop.f32.mrf.mxu1 }
 0xae2   :  { %3713 = vmatpush1.bf16.msra.mxu0 %v3602_v44  ;;  %v3594_v40 = vmax.f32 %v3553_v26, 0.0 }
 0xae3   :  { %3714 = vmatprep.subr.bf16.mxu0 %v4989_v53  ;;  %v4716_v29 = vpop.f32.mrf.mxu1 }
 0xae4   :  { %v3597_v41 = vmax.f32 %v4716_v29, 0.0  ;;  %v3609_v46 = vpack.c.bf16 %v3595_v39, %v3594_v40 }
 0xae5   :  { %v3563_v34 = vpop.f32.mrf.mxu1 }
 0xae6   :  { %3715 = vmatpush1.bf16.msra.mxu0 %v3601_v24  ;;  %v3596_v38 = vmax.f32 %v3563_v34, 0.0 }
 0xae7   :  { %3716 = vmatprep.subr.bf16.mxu0 %v4989_v53 }
 0xae8   :  { %v3610_v42 = vpack.c.bf16 %v3597_v41, %v3596_v38 }
 0xaea   :  { %3717 = vmatpush1.bf16.msra.mxu0 %v3600_v28 }
 0xaeb   :  { %3718 = vmatprep.subr.bf16.mxu0 %v4989_v53 }
 0xaee   :  { %3719 = vmatpush1.bf16.msra.mxu0 %v3599_v33 }
 0xaef   :  { %3720 = vmatprep.subr.bf16.mxu0 %v4989_v53 }
 0xaf2   :  { %3721 = vmatpush1.bf16.msra.mxu0 %v3598_v36 }
 0xaf3   :  { %3728 = vmatprep.subr.bf16.mxu0 %v4989_v53 }
 0xaf6   :  { %3729 = vmatpush2.bf16.msra.mxu0 %v3610_v42 }
 0xaf7   :  { %3730 = vmatprep.subr.bf16.mxu0 %v4989_v53 }
 0xafa   :  { %3731 = vmatpush2.bf16.msra.mxu0 %v3609_v46 }
 0xafb   :  { %3732 = vmatprep.subr.bf16.mxu0 %v4989_v53 }
 0xafe   :  { %3733 = vmatpush2.bf16.msra.mxu0 %v3608_v50 }
 0xaff   :  { %3734 = vmatprep.subr.bf16.mxu0 %v4989_v53 }
 0xb02   :  { %3735 = vmatpush2.bf16.msra.mxu0 %v3607_v58 }
 0xb03   :  { %3736 = vmatprep.subr.bf16.mxu0 %v4989_v53  ;;  %v4863_v53 = vld [vmem:[#allocation7 + $0x248] ss:$8 sps:$4 sm:$0xff]  }
 0xb06   :  { %3737 = vmatpush2.bf16.msra.mxu0 %v3606_v60 }
 0xb09   :  { %3739 = vmatmul.mubr.bf16.vlgmr.msra.gmra.mxu0 %v4849_v20 }
 0xb0a   :  { %4164 = vmatprep.mubr.msk.bf16.mxu0 %vm530_vm1, %v4852_v61  ;;  %v3815_v61 = vld [vmem:[#allocation8 + $0x14] sm:$0xf] }
 0xb11   :  { %3747 = vmatmul.mubr.bf16.gmra.mxu0 %v4854_v62 }
 0xb12   :  { %4165 = vmatprep.mubr.msk.bf16.mxu0 %vm530_vm1, %v4855_v0  ;;  %v3863_v0 = vld [vmem:[#allocation10] sm:$0x1] }
 0xb19   :  { %3755 = vmatmul.mubr.bf16.gmra.mxu0 %v4857_v57 }
 0xb1a   :  { %4166 = vmatprep.mubr.msk.bf16.mxu0 %vm530_vm1, %v4858_v1 }
 0xb21   :  { %3763 = vmatmul.mubr.bf16.gmra.mxu0 %v4860_v2 }
 0xb22   :  { %4167 = vmatprep.mubr.msk.bf16.mxu0 %vm530_vm1, %v4861_v54 }
 0xb29   :  { %3771 = vmatmul.mubr.bf16.gmra.mxu0 %v4863_v53 }
 0xb2a   :  { %4168 = vmatprep.mubr.msk.bf16.mxu0 %vm530_vm1, %v4864_v3 }
 0xb31   :  { %3779 = vmatmul.mubr.bf16.gmra.mxu0 %v4866_v4 }
 0xb32   :  { %4169 = vmatprep.mubr.msk.bf16.mxu0 %vm530_vm1, %v4162_v5 }
 0xb39   :  { %3787 = vmatmul.mubr.bf16.gmra.mxu0 %v4161_v48 }
 0xbc9   :  { %v3740_v7 = vpop.f32.mrf.mxu0 }
 0xbca   :  { %v3794_v12 = vmax.f32 %v3740_v7, 0.0 }
 0xbcb   :  { %v3742_v8 = vpop.f32.mrf.mxu0 }
 0xbcd   :  { %v3743_v11 = vpop.f32.mrf.mxu0 }
 0xbce   :  { %v3795_v13 = vmax.f32 %v3743_v11, 0.0 }
 0xbcf   :  { %v3745_v14 = vpop.f32.mrf.mxu0 }
 0xbd0   :  { %v3807_v15 = vpack.c.bf16 %v3795_v13, %v3794_v12 }
 0xbd1   :  { %v3748_v16 = vpop.f32.mrf.mxu0 }
 0xbd2   :  { %v3796_v60 = vmax.f32 %v3748_v16, 0.0 }
 0xbd3   :  { %v3750_v17 = vpop.f32.mrf.mxu0 }
 0xbd5   :  { %v3751_v10 = vpop.f32.mrf.mxu0 }
 0xbd6   :  { %v3797_v58 = vmax.f32 %v3751_v10, 0.0 }
 0xbd7   :  { %v3753_v18 = vpop.f32.mrf.mxu0 }
 0xbd8   :  { %v3808_v20 = vpack.c.bf16 %v3797_v58, %v3796_v60 }
 0xbd9   :  { %v3756_v19 = vpop.f32.mrf.mxu0 }
 0xbda   :  { %v3798_v56 = vmax.f32 %v3756_v19, 0.0 }
 0xbdb   :  { %v3758_v9 = vpop.f32.mrf.mxu0 }
 0xbdd   :  { %v3759_v51 = vpop.f32.mrf.mxu0 }
 0xbde   :  { %v3799_v50 = vmax.f32 %v3759_v51, 0.0 }
 0xbdf   :  { %v3761_v21 = vpop.f32.mrf.mxu0 }
 0xbe0   :  { %v3809_v59 = vpack.c.bf16 %v3799_v50, %v3798_v56 }
 0xbe1   :  { %v3764_v63 = vpop.f32.mrf.mxu0 }
 0xbe2   :  { %v3800_v49 = vmax.f32 %v3764_v63, 0.0 }
 0xbe3   :  { %v3766_v44 = vpop.f32.mrf.mxu0 }
 0xbe5   :  { %v3767_v55 = vpop.f32.mrf.mxu0 }
 0xbe6   :  { %v3801_v45 = vmax.f32 %v3767_v55, 0.0 }
 0xbe7   :  { %v3769_v37 = vpop.f32.mrf.mxu0 }
 0xbe8   :  { %v3810_v52 = vpack.c.bf16 %v3801_v45, %v3800_v49 }
 0xbe9   :  { %v3772_v22 = vpop.f32.mrf.mxu0 }
 0xbea   :  { %v3802_v43 = vmax.f32 %v3772_v22, 0.0 }
 0xbeb   :  { %v3774_v23 = vpop.f32.mrf.mxu0 }
 0xbed   :  { %v3775_v24 = vpop.f32.mrf.mxu0 }
 0xbee   :  { %v3803_v40 = vmax.f32 %v3775_v24, 0.0 }
 0xbef   :  { %v3777_v25 = vpop.f32.mrf.mxu0 }
 0xbf0   :  { %v3811_v46 = vpack.c.bf16 %v3803_v40, %v3802_v43 }
 0xbf1   :  { %v3780_v26 = vpop.f32.mrf.mxu0 }
 0xbf2   :  { %v3804_v38 = vmax.f32 %v3780_v26, 0.0 }
 0xbf3   :  { %v3782_v27 = vpop.f32.mrf.mxu0 }
 0xbf5   :  { %v3783_v28 = vpop.f32.mrf.mxu0 }
 0xbf6   :  { %v3805_v35 = vmax.f32 %v3783_v28, 0.0 }
 0xbf7   :  { %v3785_v29 = vpop.f32.mrf.mxu0 }
 0xbf8   :  { %v3812_v42 = vpack.c.bf16 %v3805_v35, %v3804_v38 }
 0xbf9   :  { %v3788_v31 = vpop.f32.mrf.mxu0 }
 0xbfa   :  { %v3806_v32 = vmax.f32 %v3788_v31, 0.0 }
 0xbfb   :  { %v3790_v33 = vpop.f32.mrf.mxu0 }
 0xbfc   :  { %v3813_v34 = vpack.c.bf16 %v3806_v32, %v3806_v32 }
 0xbfd   :  { %v3791_v36 = vpop.f32.mrf.mxu0 }
 0xbfe   :  { %v3820_v41 = vsel %vm1249_vm3, %v3813_v34, 0 }
 0xbff   :  { %v3792_v39 = vpop.f32.mrf.mxu0  ;;  %4718 = vmatpush3.bf16.msra.mxu1 %v3820_v41 }
 0xc00   :  { %4719 = vmatprep.subr.bf16.mxu1 %v4990_v30 }
 0xc03   :  { %4720 = vmatpush3.bf16.msra.mxu1 %v3812_v42 }
 0xc04   :  { %4721 = vmatprep.subr.bf16.mxu1 %v4990_v30 }
 0xc07   :  { %4722 = vmatpush3.bf16.msra.mxu1 %v3811_v46 }
 0xc08   :  { %4723 = vmatprep.subr.bf16.mxu1 %v4990_v30 }
 0xc0b   :  { %4724 = vmatpush3.bf16.msra.mxu1 %v3810_v52 }
 0xc0c   :  { %4725 = vmatprep.subr.bf16.mxu1 %v4990_v30 }
 0xc0f   :  { %4726 = vmatpush3.bf16.msra.mxu1 %v3809_v59 }
 0xc10   :  { %4727 = vmatprep.subr.bf16.mxu1 %v4990_v30 }
 0xc13   :  { %4728 = vmatpush3.bf16.msra.mxu1 %v3808_v20 }
 0xc14   :  { %4729 = vmatprep.subr.bf16.mxu1 %v4990_v30 }
 0xc17   :  { %4730 = vmatpush3.bf16.msra.mxu1 %v3807_v15 }
 0xc1a   :  { %4732 = vmatmul.mubr.msk.bf16.vlgmr.msra.gmra.mxu1 %vm1245_vm4, %v3815_v61 }
 0xcda   :  { %v3856_v62 = vpop.f32.mrf.mxu1 }
 0xcdb   :  { %v3862_v57 = vadd.f32 %v3856_v62, %v5487_v47 }
 0xcdc   :  { %v4733_v1 = vpop.f32.mrf.mxu1 }
 0xcdd   :  { %v3864_v2 = vadd.f32 %v3863_v0, %v3862_v57 }
 0xcde   :  { %v3859_v54 = vpop.f32.mrf.mxu1 }
 0xcdf   :  { %3865 = vst [vmem:[#allocation10] sm:$0x1] %v3864_v2 }
 0xce0   :  { %v4734_v53 = vpop.f32.mrf.mxu1 }
 0xce1   :  { %4962 = shalt.err (!%p4959_p10)
}
 0xce2   :  { %3875 = dma.vmem_to_hbm [thread:$0]  %s3873_s3, 16, %s5535_s4, [#allocation4]  }
 0xce3   :  { %4977 = dma.done.wait [#allocation4], 16  }
 0xce4   :  { %4978 = vsyncadd [#allocation4], 4294967280 }
 0xce5   :  { %3879 = vsyncpa [#allocation3], 1 }
 0xce6   :  { %3880 = vsyncpa [#allocation6], 1 }
 0xce7   :  { %3881 = vsyncpa [#allocation9], 1 }
 0xce8   :  { %3882 = vsyncpa [#allocation4], 1 }

</bundles_post_ra>
